<compile_context>
chip_gen: v7x
topology: tpu7x:2x2x1
jax: 0.10.0
libtpu: 0.0.40
codegen_flags: <defaults>
</compile_context>

<pallas_src>
import functools

import jax
import jax.numpy as jnp
from jax.experimental import pallas as pl
from jax.experimental.pallas import tpu as pltpu


# ----------------------------- Pallas kernel -------------------------------

def _make_face_gcn_kernel(num_faces, num_boundary_pts, use_local_context):
    """Builds the fused kernel; `use_local_context` is a static Python flag."""
    F_ = num_faces
    N_ = num_boundary_pts

    def kernel(a_ref, geom_ref, bpts_ref, topo_ref, *rest):
        if use_local_context:
            (lctx_ref,
             gw1, gb1, gw2, gb2,
             pw, pb, tw, tb,
             g1w_g, g1w_b, g1w_t, g1b,
             g2w, g2b, g3w, g3b,
             f1w_x, f1w_c, f1b,
             f2w, f2b, f3w, f3b,
             out_ref) = rest
        else:
            (gw1, gb1, gw2, gb2,
             pw, pb, tw, tb,
             g1w_g, g1w_b, g1w_t, g1b,
             g2w, g2b, g3w, g3b,
             f1w_x, f1b,
             f2w, f2b, f3w, f3b,
             out_ref) = rest

        f32 = jnp.float32
        bf16 = jnp.bfloat16
        relu = lambda v: jnp.maximum(v, 0.0)

        def mm(a, b):
            # MXU matmul: bf16 operands, f32 accumulation.
            return jnp.dot(a.astype(bf16), b.astype(bf16),
                           preferred_element_type=f32)

        A = a_ref[...]                                            # [F, F] bf16

        # --- GeometricFeatureMLP: 13 -> 32 -> 64 ----------------------------
        h = relu(mm(geom_ref[...], gw1[...]) + gb1[...])          # [F, 32]
        geom_out = relu(mm(h, gw2[...]) + gb2[...])               # [F, 64]

        # --- BoundaryPointNet: one fused matmul + max-pool over points ------
        hb = relu(mm(bpts_ref[...], pw[...]) + pb[...])           # [F*N, 64]
        boundary_out = jnp.max(hb.reshape(F_, N_, 64), axis=1)    # [F, 64]

        # --- TopologyGCN: rank-1 broadcast (VPU) then one A matmul ----------
        topo_x = topo_ref[...] * tw[...]                          # [F, 64] f32
        topo_out = relu(mm(A, topo_x) + tb[...])                  # [F, 64]

        # --- GCNBlock 1 (in=192 via pre-split weights, out=256) -------------
        x = relu(
            mm(mm(A, geom_out), g1w_g[...])
            + mm(mm(A, boundary_out), g1w_b[...])
            + mm(mm(A, topo_out), g1w_t[...])
            + g1b[...]
        )                                                         # [F, 256]

        # --- GCNBlock 2 (256 -> 256) -----------------------------------------
        x = relu(mm(mm(A, x), g2w[...]) + g2b[...])               # [F, 256]

        # --- GCNBlock 3 (256 -> 128): weight first, A matmul at N=128 --------
        x = relu(mm(A, mm(x, g3w[...])) + g3b[...])               # [F, 128]

        # --- fc1 with split weights; local-context branch statically gated ---
        pre = mm(x, f1w_x[...]) + f1b[...]
        if use_local_context:
            pre = pre + mm(lctx_ref[...], f1w_c[...])
        x = relu(pre)                                             # [F, 128]

        # F.dropout(p=0.3) is an inference-time no-op (eval mode).
        # TODO(synk): training-mode dropout (pltpu.prng_random_bits mask) not emitted.

        x = relu(mm(x, f2w[...]) + f2b[...])                      # [F, 64]
        logits = mm(x, f3w[...]) + f3b[...]                       # [F, 128] (padded)
        out_ref[...] = jax.nn.sigmoid(logits)

    return kernel


# ------------------------------ JAX wrapper --------------------------------

def build_normalized_adjacency(face_edge_index, num_faces):
    """Dense symmetric GCN-normalized adjacency with (idempotent) self loops."""
    src, dst = face_edge_index[0], face_edge_index[1]
    adj = jnp.zeros((num_faces, num_faces), jnp.float32)
    adj = adj.at[src, dst].set(1.0)
    adj = adj.at[dst, src].set(1.0)
    # set (not add) the diagonal: pre-existing i==i edges must not double-count
    adj = jnp.maximum(adj, jnp.eye(num_faces, dtype=jnp.float32))
    deg = jnp.sum(adj, axis=1)
    d_inv_sqrt = jax.lax.rsqrt(jnp.maximum(deg, 1e-12))
    return adj * d_inv_sqrt[:, None] * d_inv_sqrt[None, :]


def init_params(key, num_classes):
    """Deterministic synthetic parameters (shapes follow the PyTorch module)."""
    dims = [
        ("gw1", (13, 32)), ("gb1", (1, 32)),
        ("gw2", (32, 64)), ("gb2", (1, 64)),
        ("pw", (3, 64)),   ("pb", (1, 64)),
        ("tw", (1, 64)),   ("tb", (1, 64)),
        ("g1w", (192, 256)), ("g1b", (1, 256)),
        ("g2w", (256, 256)), ("g2b", (1, 256)),
        ("g3w", (256, 128)), ("g3b", (1, 128)),
        ("f1w", (192, 128)), ("f1b", (1, 128)),
        ("f2w", (128, 64)),  ("f2b", (1, 64)),
        ("f3w", (64, num_classes)), ("f3b", (1, num_classes)),
    ]
    params = {}
    keys = jax.random.split(key, len(dims))
    for (name, shape), k in zip(dims, keys):
        fan_in = shape[0]
        scale = 1.0 / jnp.sqrt(jnp.float32(max(fan_in, 1)))
        params[name] = jax.random.normal(k, shape, jnp.float32) * scale
    return params


_OUT_PAD = 128  # lane-dense output width


@functools.partial(jax.jit,
                   static_argnames=("num_classes", "use_local_context"))
def face_operation_gcn(params, geom_feat, boundary_pts, topo_feat,
                       face_edge_index, local_context, num_classes,
                       use_local_context):
    num_faces, n_pts, _ = boundary_pts.shape
    bf16 = jnp.bfloat16

    # Largest operand in bf16: halves VMEM/DMA bytes, enables native MXU bf16.
    a_hat = build_normalized_adjacency(face_edge_index, num_faces).astype(bf16)

    # Flatten boundary points so the shared point MLP is one matmul.
    bpts_flat = boundary_pts.reshape(num_faces * n_pts, 3)

    # Pre-split concat weights (tile-aligned operands, no in-kernel slicing).
    g1w = params["g1w"]
    f1w = params["f1w"]

    # Lane-dense output: zero-pad the last layer to 128 output lanes.
    c = num_classes
    f3w_pad = jnp.zeros((64, _OUT_PAD), jnp.float32).at[:, :c].set(params["f3w"])
    f3b_pad = jnp.zeros((1, _OUT_PAD), jnp.float32).at[:, :c].set(params["f3b"])

    weight_args = [
        params["gw1"].astype(bf16), params["gb1"],
        params["gw2"].astype(bf16), params["gb2"],
        params["pw"].astype(bf16),  params["pb"],
        params["tw"],               params["tb"],   # tw used on the VPU -> f32
        g1w[0:64].astype(bf16), g1w[64:128].astype(bf16),
        g1w[128:192].astype(bf16), params["g1b"],
        params["g2w"].astype(bf16), params["g2b"],
        params["g3w"].astype(bf16), params["g3b"],
        f1w[0:128].astype(bf16),
    ]
    if use_local_context:
        weight_args.append(f1w[128:192].astype(bf16))
    weight_args += [
        params["f1b"],
        params["f2w"].astype(bf16), params["f2b"],
        f3w_pad.astype(bf16), f3b_pad,
    ]

    inputs = [a_hat, geom_feat, bpts_flat, topo_feat]
    if use_local_context:
        inputs.append(local_context)
    inputs += weight_args

    vmem = pl.BlockSpec(memory_space=pltpu.MemorySpace.VMEM)
    kernel = _make_face_gcn_kernel(num_faces, n_pts, use_local_context)

    padded = pl.pallas_call(
        kernel,
        out_shape=jax.ShapeDtypeStruct((num_faces, _OUT_PAD), jnp.float32),
        in_specs=[vmem] * len(inputs),
        out_specs=vmem,
    )(*inputs)

    return padded[:, :num_classes]


# --------------------------------- main ------------------------------------

if __name__ == "__main__":
    num_faces = 16
    num_boundary_pts = 8
    num_edges = 24
    num_classes = 5

    key = jax.random.PRNGKey(0)
    k_geom, k_bpts, k_topo, k_edge, k_params = jax.random.split(key, 5)

    geom_feat = jax.random.normal(k_geom, (num_faces, 13), jnp.float32)
    boundary_pts = jax.random.normal(
        k_bpts, (num_faces, num_boundary_pts, 3), jnp.float32)
    topo_feat = jax.random.normal(k_topo, (num_faces, 1), jnp.float32)
    face_edge_index = jax.random.randint(
        k_edge, (2, num_edges), 0, num_faces, dtype=jnp.int32)

    # global_context / local_context are None in this run -> the concat of
    # zeros is mathematically equivalent to dropping the context term, so the
    # local branch is statically gated out of the kernel.
    local_context = None

    params = init_params(k_params, num_classes)

    probs = face_operation_gcn(params, geom_feat, boundary_pts, topo_feat,
                               face_edge_index, local_context,
                               num_classes=num_classes,
                               use_local_context=False)
    probs = jax.block_until_ready(probs)

    assert probs.shape == (num_faces, num_classes)
    assert bool(jnp.all(jnp.isfinite(probs)))
    assert bool(jnp.all((probs >= 0.0) & (probs <= 1.0)))  # sigmoid outputs
    print("KERNEL_OK")
</pallas_src>

<mosaic_0001>
module attributes {stable_mosaic.version = 11 : i64} {
  func.func @kernel(%arg0: memref<16x16xbf16, #tpu.memory_space<vmem>>, %arg1: memref<16x13xf32, #tpu.memory_space<vmem>>, %arg2: memref<128x3xf32, #tpu.memory_space<vmem>>, %arg3: memref<16x1xf32, #tpu.memory_space<vmem>>, %arg4: memref<13x32xbf16, #tpu.memory_space<vmem>>, %arg5: memref<1x32xf32, #tpu.memory_space<vmem>>, %arg6: memref<32x64xbf16, #tpu.memory_space<vmem>>, %arg7: memref<1x64xf32, #tpu.memory_space<vmem>>, %arg8: memref<3x64xbf16, #tpu.memory_space<vmem>>, %arg9: memref<1x64xf32, #tpu.memory_space<vmem>>, %arg10: memref<1x64xf32, #tpu.memory_space<vmem>>, %arg11: memref<1x64xf32, #tpu.memory_space<vmem>>, %arg12: memref<64x256xbf16, #tpu.memory_space<vmem>>, %arg13: memref<64x256xbf16, #tpu.memory_space<vmem>>, %arg14: memref<64x256xbf16, #tpu.memory_space<vmem>>, %arg15: memref<1x256xf32, #tpu.memory_space<vmem>>, %arg16: memref<256x256xbf16, #tpu.memory_space<vmem>>, %arg17: memref<1x256xf32, #tpu.memory_space<vmem>>, %arg18: memref<256x128xbf16, #tpu.memory_space<vmem>>, %arg19: memref<1x128xf32, #tpu.memory_space<vmem>>, %arg20: memref<128x128xbf16, #tpu.memory_space<vmem>>, %arg21: memref<1x128xf32, #tpu.memory_space<vmem>>, %arg22: memref<128x64xbf16, #tpu.memory_space<vmem>>, %arg23: memref<1x64xf32, #tpu.memory_space<vmem>>, %arg24: memref<64x128xbf16, #tpu.memory_space<vmem>>, %arg25: memref<1x128xf32, #tpu.memory_space<vmem>>, %arg26: memref<16x128xf32, #tpu.memory_space<vmem>>) attributes {dimension_semantics = [], scalar_prefetch = 0 : i64, scratch_operands = 0 : i64, tpu.core_type = #tpu.core_type<tc>} {
    %c0 = arith.constant 0 : index
    %c0_0 = arith.constant 0 : index
    %0 = vector.load %arg0[%c0, %c0_0] : memref<16x16xbf16, #tpu.memory_space<vmem>>, vector<16x16xbf16>
    %c0_1 = arith.constant 0 : index
    %c0_2 = arith.constant 0 : index
    %1 = vector.load %arg1[%c0_1, %c0_2] : memref<16x13xf32, #tpu.memory_space<vmem>>, vector<16x13xf32>
    %c0_3 = arith.constant 0 : index
    %c0_4 = arith.constant 0 : index
    %2 = vector.load %arg4[%c0_3, %c0_4] : memref<13x32xbf16, #tpu.memory_space<vmem>>, vector<13x32xbf16>
    %3 = arith.truncf %1 : vector<16x13xf32> to vector<16x13xbf16>
    %cst = arith.constant dense<0.000000e+00> : vector<16x32xf32>
    %4 = tpu.matmul %3, %2, %cst {dimension_numbers = #tpu.dot_dimension_numbers<[1], [0], [0], [1], [0, 0, 1, 1], [], []>} : vector<16x13xbf16>, vector<13x32xbf16>, vector<16x32xf32> -> vector<16x32xf32>
    %c0_5 = arith.constant 0 : index
    %c0_6 = arith.constant 0 : index
    %5 = vector.load %arg5[%c0_5, %c0_6] : memref<1x32xf32, #tpu.memory_space<vmem>>, vector<1x32xf32>
    %6 = vector.broadcast %5 : vector<1x32xf32> to vector<16x32xf32>
    %7 = arith.addf %4, %6 : vector<16x32xf32>
    %cst_7 = arith.constant 0.000000e+00 : f32
    %8 = vector.broadcast %cst_7 : f32 to vector<16x32xf32>
    %9 = arith.maximumf %7, %8 : vector<16x32xf32>
    %c0_8 = arith.constant 0 : index
    %c0_9 = arith.constant 0 : index
    %10 = vector.load %arg6[%c0_8, %c0_9] : memref<32x64xbf16, #tpu.memory_space<vmem>>, vector<32x64xbf16>
    %11 = arith.truncf %9 : vector<16x32xf32> to vector<16x32xbf16>
    %cst_10 = arith.constant dense<0.000000e+00> : vector<16x64xf32>
    %12 = tpu.matmul %11, %10, %cst_10 {dimension_numbers = #tpu.dot_dimension_numbers<[1], [0], [0], [1], [0, 0, 1, 1], [], []>} : vector<16x32xbf16>, vector<32x64xbf16>, vector<16x64xf32> -> vector<16x64xf32>
    %c0_11 = arith.constant 0 : index
    %c0_12 = arith.constant 0 : index
    %13 = vector.load %arg7[%c0_11, %c0_12] : memref<1x64xf32, #tpu.memory_space<vmem>>, vector<1x64xf32>
    %14 = vector.broadcast %13 : vector<1x64xf32> to vector<16x64xf32>
    %15 = arith.addf %12, %14 : vector<16x64xf32>
    %cst_13 = arith.constant 0.000000e+00 : f32
    %16 = vector.broadcast %cst_13 : f32 to vector<16x64xf32>
    %17 = arith.maximumf %15, %16 : vector<16x64xf32>
    %c0_14 = arith.constant 0 : index
    %c0_15 = arith.constant 0 : index
    %18 = vector.load %arg2[%c0_14, %c0_15] : memref<128x3xf32, #tpu.memory_space<vmem>>, vector<128x3xf32>
    %c0_16 = arith.constant 0 : index
    %c0_17 = arith.constant 0 : index
    %19 = vector.load %arg8[%c0_16, %c0_17] : memref<3x64xbf16, #tpu.memory_space<vmem>>, vector<3x64xbf16>
    %20 = arith.truncf %18 : vector<128x3xf32> to vector<128x3xbf16>
    %cst_18 = arith.constant dense<0.000000e+00> : vector<128x64xf32>
    %21 = tpu.matmul %20, %19, %cst_18 {dimension_numbers = #tpu.dot_dimension_numbers<[1], [0], [0], [1], [0, 0, 1, 1], [], []>} : vector<128x3xbf16>, vector<3x64xbf16>, vector<128x64xf32> -> vector<128x64xf32>
    %c0_19 = arith.constant 0 : index
    %c0_20 = arith.constant 0 : index
    %22 = vector.load %arg9[%c0_19, %c0_20] : memref<1x64xf32, #tpu.memory_space<vmem>>, vector<1x64xf32>
    %23 = vector.broadcast %22 : vector<1x64xf32> to vector<128x64xf32>
    %24 = arith.addf %21, %23 : vector<128x64xf32>
    %cst_21 = arith.constant 0.000000e+00 : f32
    %25 = vector.broadcast %cst_21 : f32 to vector<128x64xf32>
    %26 = arith.maximumf %24, %25 : vector<128x64xf32>
    %27 = vector.shape_cast %26 : vector<128x64xf32> to vector<16x8x64xf32>
    %cst_22 = arith.constant dense<0xFF800000> : vector<16x64xf32>
    %28 = vector.multi_reduction <maximumf>, %27, %cst_22 [1] : vector<16x8x64xf32> to vector<16x64xf32>
    %c0_23 = arith.constant 0 : index
    %c0_24 = arith.constant 0 : index
    %29 = vector.load %arg3[%c0_23, %c0_24] : memref<16x1xf32, #tpu.memory_space<vmem>>, vector<16x1xf32>
    %c0_25 = arith.constant 0 : index
    %c0_26 = arith.constant 0 : index
    %30 = vector.load %arg10[%c0_25, %c0_26] : memref<1x64xf32, #tpu.memory_space<vmem>>, vector<1x64xf32>
    %31 = vector.broadcast %29 : vector<16x1xf32> to vector<16x64xf32>
    %32 = vector.broadcast %30 : vector<1x64xf32> to vector<16x64xf32>
    %33 = arith.mulf %31, %32 : vector<16x64xf32>
    %34 = arith.truncf %33 : vector<16x64xf32> to vector<16x64xbf16>
    %cst_27 = arith.constant dense<0.000000e+00> : vector<16x64xf32>
    %35 = tpu.matmul %0, %34, %cst_27 {dimension_numbers = #tpu.dot_dimension_numbers<[1], [0], [0], [1], [0, 0, 1, 1], [], []>} : vector<16x16xbf16>, vector<16x64xbf16>, vector<16x64xf32> -> vector<16x64xf32>
    %c0_28 = arith.constant 0 : index
    %c0_29 = arith.constant 0 : index
    %36 = vector.load %arg11[%c0_28, %c0_29] : memref<1x64xf32, #tpu.memory_space<vmem>>, vector<1x64xf32>
    %37 = vector.broadcast %36 : vector<1x64xf32> to vector<16x64xf32>
    %38 = arith.addf %35, %37 : vector<16x64xf32>
    %cst_30 = arith.constant 0.000000e+00 : f32
    %39 = vector.broadcast %cst_30 : f32 to vector<16x64xf32>
    %40 = arith.maximumf %38, %39 : vector<16x64xf32>
    %41 = arith.truncf %17 : vector<16x64xf32> to vector<16x64xbf16>
    %cst_31 = arith.constant dense<0.000000e+00> : vector<16x64xf32>
    %42 = tpu.matmul %0, %41, %cst_31 {dimension_numbers = #tpu.dot_dimension_numbers<[1], [0], [0], [1], [0, 0, 1, 1], [], []>} : vector<16x16xbf16>, vector<16x64xbf16>, vector<16x64xf32> -> vector<16x64xf32>
    %c0_32 = arith.constant 0 : index
    %c0_33 = arith.constant 0 : index
    %43 = vector.load %arg12[%c0_32, %c0_33] : memref<64x256xbf16, #tpu.memory_space<vmem>>, vector<64x256xbf16>
    %44 = arith.truncf %42 : vector<16x64xf32> to vector<16x64xbf16>
    %cst_34 = arith.constant dense<0.000000e+00> : vector<16x256xf32>
    %45 = tpu.matmul %44, %43, %cst_34 {dimension_numbers = #tpu.dot_dimension_numbers<[1], [0], [0], [1], [0, 0, 1, 1], [], []>} : vector<16x64xbf16>, vector<64x256xbf16>, vector<16x256xf32> -> vector<16x256xf32>
    %46 = arith.truncf %28 : vector<16x64xf32> to vector<16x64xbf16>
    %cst_35 = arith.constant dense<0.000000e+00> : vector<16x64xf32>
    %47 = tpu.matmul %0, %46, %cst_35 {dimension_numbers = #tpu.dot_dimension_numbers<[1], [0], [0], [1], [0, 0, 1, 1], [], []>} : vector<16x16xbf16>, vector<16x64xbf16>, vector<16x64xf32> -> vector<16x64xf32>
    %c0_36 = arith.constant 0 : index
    %c0_37 = arith.constant 0 : index
    %48 = vector.load %arg13[%c0_36, %c0_37] : memref<64x256xbf16, #tpu.memory_space<vmem>>, vector<64x256xbf16>
    %49 = arith.truncf %47 : vector<16x64xf32> to vector<16x64xbf16>
    %cst_38 = arith.constant dense<0.000000e+00> : vector<16x256xf32>
    %50 = tpu.matmul %49, %48, %cst_38 {dimension_numbers = #tpu.dot_dimension_numbers<[1], [0], [0], [1], [0, 0, 1, 1], [], []>} : vector<16x64xbf16>, vector<64x256xbf16>, vector<16x256xf32> -> vector<16x256xf32>
    %51 = arith.addf %45, %50 : vector<16x256xf32>
    %52 = arith.truncf %40 : vector<16x64xf32> to vector<16x64xbf16>
    %cst_39 = arith.constant dense<0.000000e+00> : vector<16x64xf32>
    %53 = tpu.matmul %0, %52, %cst_39 {dimension_numbers = #tpu.dot_dimension_numbers<[1], [0], [0], [1], [0, 0, 1, 1], [], []>} : vector<16x16xbf16>, vector<16x64xbf16>, vector<16x64xf32> -> vector<16x64xf32>
    %c0_40 = arith.constant 0 : index
    %c0_41 = arith.constant 0 : index
    %54 = vector.load %arg14[%c0_40, %c0_41] : memref<64x256xbf16, #tpu.memory_space<vmem>>, vector<64x256xbf16>
    %55 = arith.truncf %53 : vector<16x64xf32> to vector<16x64xbf16>
    %cst_42 = arith.constant dense<0.000000e+00> : vector<16x256xf32>
    %56 = tpu.matmul %55, %54, %cst_42 {dimension_numbers = #tpu.dot_dimension_numbers<[1], [0], [0], [1], [0, 0, 1, 1], [], []>} : vector<16x64xbf16>, vector<64x256xbf16>, vector<16x256xf32> -> vector<16x256xf32>
    %57 = arith.addf %51, %56 : vector<16x256xf32>
    %c0_43 = arith.constant 0 : index
    %c0_44 = arith.constant 0 : index
    %58 = vector.load %arg15[%c0_43, %c0_44] : memref<1x256xf32, #tpu.memory_space<vmem>>, vector<1x256xf32>
    %59 = vector.broadcast %58 : vector<1x256xf32> to vector<16x256xf32>
    %60 = arith.addf %57, %59 : vector<16x256xf32>
    %cst_45 = arith.constant 0.000000e+00 : f32
    %61 = vector.broadcast %cst_45 : f32 to vector<16x256xf32>
    %62 = arith.maximumf %60, %61 : vector<16x256xf32>
    %63 = arith.truncf %62 : vector<16x256xf32> to vector<16x256xbf16>
    %cst_46 = arith.constant dense<0.000000e+00> : vector<16x256xf32>
    %64 = tpu.matmul %0, %63, %cst_46 {dimension_numbers = #tpu.dot_dimension_numbers<[1], [0], [0], [1], [0, 0, 1, 1], [], []>} : vector<16x16xbf16>, vector<16x256xbf16>, vector<16x256xf32> -> vector<16x256xf32>
    %c0_47 = arith.constant 0 : index
    %c0_48 = arith.constant 0 : index
    %65 = vector.load %arg16[%c0_47, %c0_48] : memref<256x256xbf16, #tpu.memory_space<vmem>>, vector<256x256xbf16>
    %66 = arith.truncf %64 : vector<16x256xf32> to vector<16x256xbf16>
    %cst_49 = arith.constant dense<0.000000e+00> : vector<16x256xf32>
    %67 = tpu.matmul %66, %65, %cst_49 {dimension_numbers = #tpu.dot_dimension_numbers<[1], [0], [0], [1], [0, 0, 1, 1], [], []>} : vector<16x256xbf16>, vector<256x256xbf16>, vector<16x256xf32> -> vector<16x256xf32>
    %c0_50 = arith.constant 0 : index
    %c0_51 = arith.constant 0 : index
    %68 = vector.load %arg17[%c0_50, %c0_51] : memref<1x256xf32, #tpu.memory_space<vmem>>, vector<1x256xf32>
    %69 = vector.broadcast %68 : vector<1x256xf32> to vector<16x256xf32>
    %70 = arith.addf %67, %69 : vector<16x256xf32>
    %cst_52 = arith.constant 0.000000e+00 : f32
    %71 = vector.broadcast %cst_52 : f32 to vector<16x256xf32>
    %72 = arith.maximumf %70, %71 : vector<16x256xf32>
    %c0_53 = arith.constant 0 : index
    %c0_54 = arith.constant 0 : index
    %73 = vector.load %arg18[%c0_53, %c0_54] : memref<256x128xbf16, #tpu.memory_space<vmem>>, vector<256x128xbf16>
    %74 = arith.truncf %72 : vector<16x256xf32> to vector<16x256xbf16>
    %cst_55 = arith.constant dense<0.000000e+00> : vector<16x128xf32>
    %75 = tpu.matmul %74, %73, %cst_55 {dimension_numbers = #tpu.dot_dimension_numbers<[1], [0], [0], [1], [0, 0, 1, 1], [], []>} : vector<16x256xbf16>, vector<256x128xbf16>, vector<16x128xf32> -> vector<16x128xf32>
    %76 = arith.truncf %75 : vector<16x128xf32> to vector<16x128xbf16>
    %cst_56 = arith.constant dense<0.000000e+00> : vector<16x128xf32>
    %77 = tpu.matmul %0, %76, %cst_56 {dimension_numbers = #tpu.dot_dimension_numbers<[1], [0], [0], [1], [0, 0, 1, 1], [], []>} : vector<16x16xbf16>, vector<16x128xbf16>, vector<16x128xf32> -> vector<16x128xf32>
    %c0_57 = arith.constant 0 : index
    %c0_58 = arith.constant 0 : index
    %78 = vector.load %arg19[%c0_57, %c0_58] : memref<1x128xf32, #tpu.memory_space<vmem>>, vector<1x128xf32>
    %79 = vector.broadcast %78 : vector<1x128xf32> to vector<16x128xf32>
    %80 = arith.addf %77, %79 : vector<16x128xf32>
    %cst_59 = arith.constant 0.000000e+00 : f32
    %81 = vector.broadcast %cst_59 : f32 to vector<16x128xf32>
    %82 = arith.maximumf %80, %81 : vector<16x128xf32>
    %c0_60 = arith.constant 0 : index
    %c0_61 = arith.constant 0 : index
    %83 = vector.load %arg20[%c0_60, %c0_61] : memref<128x128xbf16, #tpu.memory_space<vmem>>, vector<128x128xbf16>
    %84 = arith.truncf %82 : vector<16x128xf32> to vector<16x128xbf16>
    %cst_62 = arith.constant dense<0.000000e+00> : vector<16x128xf32>
    %85 = tpu.matmul %84, %83, %cst_62 {dimension_numbers = #tpu.dot_dimension_numbers<[1], [0], [0], [1], [0, 0, 1, 1], [], []>} : vector<16x128xbf16>, vector<128x128xbf16>, vector<16x128xf32> -> vector<16x128xf32>
    %c0_63 = arith.constant 0 : index
    %c0_64 = arith.constant 0 : index
    %86 = vector.load %arg21[%c0_63, %c0_64] : memref<1x128xf32, #tpu.memory_space<vmem>>, vector<1x128xf32>
    %87 = vector.broadcast %86 : vector<1x128xf32> to vector<16x128xf32>
    %88 = arith.addf %85, %87 : vector<16x128xf32>
    %cst_65 = arith.constant 0.000000e+00 : f32
    %89 = vector.broadcast %cst_65 : f32 to vector<16x128xf32>
    %90 = arith.maximumf %88, %89 : vector<16x128xf32>
    %c0_66 = arith.constant 0 : index
    %c0_67 = arith.constant 0 : index
    %91 = vector.load %arg22[%c0_66, %c0_67] : memref<128x64xbf16, #tpu.memory_space<vmem>>, vector<128x64xbf16>
    %92 = arith.truncf %90 : vector<16x128xf32> to vector<16x128xbf16>
    %cst_68 = arith.constant dense<0.000000e+00> : vector<16x64xf32>
    %93 = tpu.matmul %92, %91, %cst_68 {dimension_numbers = #tpu.dot_dimension_numbers<[1], [0], [0], [1], [0, 0, 1, 1], [], []>} : vector<16x128xbf16>, vector<128x64xbf16>, vector<16x64xf32> -> vector<16x64xf32>
    %c0_69 = arith.constant 0 : index
    %c0_70 = arith.constant 0 : index
    %94 = vector.load %arg23[%c0_69, %c0_70] : memref<1x64xf32, #tpu.memory_space<vmem>>, vector<1x64xf32>
    %95 = vector.broadcast %94 : vector<1x64xf32> to vector<16x64xf32>
    %96 = arith.addf %93, %95 : vector<16x64xf32>
    %cst_71 = arith.constant 0.000000e+00 : f32
    %97 = vector.broadcast %cst_71 : f32 to vector<16x64xf32>
    %98 = arith.maximumf %96, %97 : vector<16x64xf32>
    %c0_72 = arith.constant 0 : index
    %c0_73 = arith.constant 0 : index
    %99 = vector.load %arg24[%c0_72, %c0_73] : memref<64x128xbf16, #tpu.memory_space<vmem>>, vector<64x128xbf16>
    %100 = arith.truncf %98 : vector<16x64xf32> to vector<16x64xbf16>
    %cst_74 = arith.constant dense<0.000000e+00> : vector<16x128xf32>
    %101 = tpu.matmul %100, %99, %cst_74 {dimension_numbers = #tpu.dot_dimension_numbers<[1], [0], [0], [1], [0, 0, 1, 1], [], []>} : vector<16x64xbf16>, vector<64x128xbf16>, vector<16x128xf32> -> vector<16x128xf32>
    %c0_75 = arith.constant 0 : index
    %c0_76 = arith.constant 0 : index
    %102 = vector.load %arg25[%c0_75, %c0_76] : memref<1x128xf32, #tpu.memory_space<vmem>>, vector<1x128xf32>
    %103 = vector.broadcast %102 : vector<1x128xf32> to vector<16x128xf32>
    %104 = arith.addf %101, %103 : vector<16x128xf32>
    %105 = arith.negf %104 : vector<16x128xf32>
    %106 = math.exp %105 : vector<16x128xf32>
    %cst_77 = arith.constant 1.000000e+00 : f32
    %107 = vector.broadcast %cst_77 : f32 to vector<16x128xf32>
    %108 = arith.addf %107, %106 : vector<16x128xf32>
    %109 = arith.divf %107, %108 : vector<16x128xf32>
    %c0_78 = arith.constant 0 : index
    %c0_79 = arith.constant 0 : index
    %110 = vector.load %arg26[%c0_78, %c0_79] : memref<16x128xf32, #tpu.memory_space<vmem>>, vector<16x128xf32>
    tpu.vector_store %arg26[%c0_78, %c0_79], %109 {strides = array<i32>} : memref<16x128xf32, #tpu.memory_space<vmem>>, vector<16x128xf32>,
    return
  }
}

</mosaic_0001>

<bundles_post_ra>
// kernel: face_operation_gcn.1
= control target key start
LH: loop header
LB: loop body
LE: loop exit
PB: predicated region body
PF: predicated region fallthrough
CT: control target
= control target key end

     0   :  { %vm107_vm0 = vcmask 1045504   ;;  %vm108_vm1 = vcmask 1046528   ;;  %v2412_v0 = vmov 0.0   ;;  %v2413_v2 = vmov 65535   ;;  %s3089_s4 = inlined_call_operand.vmem [shape: bf16[13,32], index: 4, kind: input, shape index: {}]   ;;  %s3090_s1 = inlined_call_operand.vmem [shape: f32[16,13], index: 1, kind: input, shape index: {}]   ;;  %s3091_s3 = inlined_call_operand.vmem [shape: f32[16,1], index: 3, kind: input, shape index: {}]   ;;  %s3092_s6 = inlined_call_operand.vmem [shape: bf16[32,64], index: 6, kind: input, shape index: {}]   ;;  %s3093_s8 = inlined_call_operand.vmem [shape: bf16[3,64], index: 8, kind: input, shape index: {}]   ;;  %s3094_s10 = inlined_call_operand.vmem [shape: f32[1,64], index: 10, kind: input, shape index: {}]   ;;  %s3095_s0 = inlined_call_operand.vmem [shape: bf16[16,16], index: 0, kind: input, shape index: {}]   ;;  %s3096_s5 = inlined_call_operand.vmem [shape: f32[1,32], index: 5, kind: input, shape index: {}]   ;;  %s3097_s2 = inlined_call_operand.vmem [shape: f32[128,3], index: 2, kind: input, shape index: {}]   ;;  %s3098_s11 = inlined_call_operand.vmem [shape: f32[1,64], index: 11, kind: input, shape index: {}]   ;;  %s3099_s13 = inlined_call_operand.vmem [shape: bf16[64,256], index: 13, kind: input, shape index: {}]   ;;  %s3100_s7 = inlined_call_operand.vmem [shape: f32[1,64], index: 7, kind: input, shape index: {}]   ;;  %s3101_s9 = inlined_call_operand.vmem [shape: f32[1,64], index: 9, kind: input, shape index: {}]   ;;  %s3102_s12 = inlined_call_operand.vmem [shape: bf16[64,256], index: 12, kind: input, shape index: {}]   ;;  %s3103_s14 = inlined_call_operand.vmem [shape: bf16[64,256], index: 14, kind: input, shape index: {}]   ;;  %s3104_s16 = inlined_call_operand.vmem [shape: bf16[256,256], index: 16, kind: input, shape index: {}]   ;;  %s3105_s15 = inlined_call_operand.vmem [shape: f32[1,256], index: 15, kind: input, shape index: {}]   ;;  %s3106_s18 = inlined_call_operand.vmem [shape: bf16[256,128], index: 18, kind: input, shape index: {}]   ;;  %s3107_s17 = inlined_call_operand.vmem [shape: f32[1,256], index: 17, kind: input, shape index: {}]   ;;  %s3108_s20 = inlined_call_operand.vmem [shape: bf16[128,128], index: 20, kind: input, shape index: {}]   ;;  %s3109_s22 = inlined_call_operand.vmem [shape: bf16[128,64], index: 22, kind: input, shape index: {}]   ;;  %s3110_s19 = inlined_call_operand.vmem [shape: f32[1,128], index: 19, kind: input, shape index: {}]   ;;  %s3111_s24 = inlined_call_operand.vmem [shape: bf16[64,128], index: 24, kind: input, shape index: {}]   ;;  %s3112_s21 = inlined_call_operand.vmem [shape: f32[1,128], index: 21, kind: input, shape index: {}]   ;;  %s3113_s23 = inlined_call_operand.vmem [shape: f32[1,64], index: 23, kind: input, shape index: {}]   ;;  %s3114_s25 = inlined_call_operand.vmem [shape: f32[1,128], index: 25, kind: input, shape index: {}]   ;;  %s3115_s26 = inlined_call_operand.vmem [shape: f32[16,128], index: 26, kind: output, shape index: {}]  }
   0x1   :  { %3122 = sst [smem:[#allocation2_spill]] %s3089_s4  ;;  %2152 = vmatprep.subr.bf16.mxu0 %v2412_v0  ;;  %2184 = vmatprep.subr.bf16.mxu1 %v2412_v0  ;;  %v109_v3 = vsel %vm107_vm0, 4294967295, %v2413_v2  ;;  %vm2414_vm2 = vmmov 0   ;;  %v2415_v9 = vmov 0   ;;  %vm103_vm3 = vcmask 105472  }
   0x2   :  { %3123 = sst [smem:[#allocation3_spill]] %s3090_s1  ;;  %v110_v6 = vsel %vm108_vm1, %v109_v3, 0  ;;  %2154 = vmatprep.mubr.msk.bf16.mxu0 %vm2414_vm2, %v2412_v0  ;;  %2186 = vmatprep.mubr.msk.bf16.mxu1 %vm2414_vm2, %v2412_v0  ;;  %vm285_vm4 = vcmask 1040384   ;;  %vm286_vm5 = vcmask 1041408   ;;  %vm552_vm6 = vcmask 130048  }
   0x3   :  { %3124 = sst [smem:[#allocation4_spill]] %s3091_s3  ;;  %2278 = vset.pattern.permute.xlu0 %v2415_v9  ;;  %v287_v14 = vsel %vm285_vm4, 4294967295, %v2413_v2  ;;  %vm181_vm7 = vcmask 261120   ;;  %vm260_vm8 = vcmask 23552   ;;  %vm405_vm9 = vcmask 523264  }
   0x4   :  { %3125 = sst [smem:[#allocation5_spill]] %s3092_s6  ;;  %s3133_s6 = sld [smem:[#allocation2_spill]]  ;;  %v288_v16 = vsel %vm286_vm5, %v287_v14, 0  ;;  %vm698_vm10 = vcmask 1041409   ;;  %vm700_vm11 = vcmask 1042434   ;;  %vm702_vm12 = vcmask 1043459  }
   0x5   :  { %3126 = sst [smem:[#allocation6_spill]] %s3093_s8  ;;  %s3134_s8 = sld [smem:[#allocation3_spill]]  ;;  %vm704_vm13 = vcmask 1044484   ;;  %vm706_vm14 = vcmask 1045509   ;;  %vm708_vm15 = vcmask 1046534   ;;  %vm710_vm0 = vcmask 1047559  }
   0x6   :  { %3127 = sst [smem:[#allocation7_spill]] %s3094_s10  ;;  %s3135_s4 = sld [smem:[#allocation4_spill]] }
   0x7   :  { %3128 = sst [smem:[#allocation8_spill]] %s3095_s0 }
   0x8   :  { %3129 = sst [smem:[#allocation9_spill]] %s3096_s5  ;;  %s3136_s5 = sld [smem:[#allocation5_spill]] }
   0x9   :  { %3130 = sst [smem:[#allocation10_spill]] %s3097_s2  ;;  %s3139_s10 = sld [smem:[#allocation8_spill]] }
   0xa   :  { %3131 = sst [smem:[#allocation11_spill]] %s3098_s11  ;;  %v2279_v1 = vld [vmem:[%s3133_s6] sm:$0x7f]   ;;  %s3138_s11 = sld [smem:[#allocation7_spill]] }
   0xb   :  { %3132 = sst [smem:[#allocation12_spill]] %s3099_s13  ;;  %v86_v4 = vld [vmem:[%s3134_s8] sm:$0xff]  ;;  %v87_v5 = vld [vmem:[%s3134_s8 + $0x8] sm:$0xff]  ;;  %v112_v8 = vand.u32 %v2279_v1, %v110_v6  ;;  %s3137_s8 = sld [smem:[#allocation6_spill]] }
   0xc   :  { %v518_v7 = vld [vmem:[%s3135_s4] sm:$0xff]  ;;  %v90_v10 = vpack.c.bf16 %v87_v5, %v86_v4  ;;  %v519_v11 = vld [vmem:[%s3135_s4 + $0x8] sm:$0xff]  ;;  %s3140_s1 = sld [smem:[#allocation9_spill]]  ;;  %s3141_s6 = sld [smem:[#allocation10_spill]] }
   0xd   :  { %523 = vperm.xlu0 %2278, %v518_v7   ;;  %2153 = vmatpush3.bf16.msra.mxu0 %v112_v8  ;;  %s3142_s30 = sld [smem:[#allocation11_spill]]  ;;  %s3143_s13 = sld [smem:[#allocation12_spill]] }
   0xe   :  { %2158 = vmatprep.subr.bf16.mxu0 %v2412_v0  ;;  %v2280_v12 = vld [vmem:[%s3136_s5] sm:$0xff]   ;;  %v2281_v13 = vld [vmem:[%s3136_s5 + $0x8] sm:$0xff]  }
   0xf   :  { %v2592_v24 = vld [vmem:[%s3139_s10] sm:$0xff]  }
  0x10   :  { %2155 = vmatmul.mubr.msk.bf16.vlgmr.msra.gmra.mrb[0].mxu0 %vm103_vm3, %v90_v10  ;;  %v1972_v19 = vld [vmem:[%s3138_s11] ss:$0 sm:$0xff] }
  0x11   :  { %528 = vperm.xlu0 %2278, %v519_v11   ;;  %2162 = vmatprep.mubr.msk.bf16.mxu0 %vm2414_vm2, %v2412_v0  ;;  %v244_v15 = vld [vmem:[%s3137_s8] sm:$0x3] }
  0x12   :  { %2159 = vmatpush3.bf16.msra.mxu0 %v2280_v12  ;;  %v290_v17 = vand.u32 %v288_v16, %v244_v15  ;;  %v1956_v25 = vld [vmem:[%s3140_s1] ss:$0 sm:$0xff]  ;;  %v229_v33 = vld [vmem:[%s3141_s6 + $0x8] sm:$0xff]  ;;  %v230_v38 = vld [vmem:[%s3141_s6 + $0x10] sm:$0xff] }
  0x13   :  { %2160 = vmatprep.subr.bf16.mxu0 %v2412_v0  ;;  %v228_v32 = vld [vmem:[%s3141_s6] sm:$0xff]  ;;  %v231_v39 = vld [vmem:[%s3141_s6 + $0x18] sm:$0xff]  ;;  %v233_v41 = vld [vmem:[%s3141_s6 + $0x28] sm:$0xff] }
  0x14   :  { %v245_v36 = vpack.c.bf16 %v229_v33, %v228_v32  ;;  %v232_v40 = vld [vmem:[%s3141_s6 + $0x20] sm:$0xff]  ;;  %v246_v42 = vpack.c.bf16 %v231_v39, %v230_v38  ;;  %v234_v44 = vld [vmem:[%s3141_s6 + $0x30] sm:$0xff]  ;;  %v235_v45 = vld [vmem:[%s3141_s6 + $0x38] sm:$0xff] }
  0x15   :  { %v247_v43 = vpack.c.bf16 %v233_v41, %v232_v40  ;;  %v236_v46 = vld [vmem:[%s3141_s6 + $0x40] sm:$0xff]  ;;  %v237_v47 = vld [vmem:[%s3141_s6 + $0x48] sm:$0xff]  ;;  %v248_v48 = vpack.c.bf16 %v235_v45, %v234_v44  ;;  %v238_v50 = vld [vmem:[%s3141_s6 + $0x50] sm:$0xff] }
  0x16   :  { %2161 = vmatpush3.bf16.msra.mxu0 %v2281_v13  ;;  %v249_v49 = vpack.c.bf16 %v237_v47, %v236_v46  ;;  %v239_v51 = vld [vmem:[%s3141_s6 + $0x58] sm:$0xff]  ;;  %v240_v52 = vld [vmem:[%s3141_s6 + $0x60] sm:$0xff]  ;;  %v241_v53 = vld [vmem:[%s3141_s6 + $0x68] sm:$0xff] }
  0x17   :  { %2166 = vmatprep.subr.bf16.mxu0 %v290_v17  ;;  %v250_v54 = vpack.c.bf16 %v239_v51, %v238_v50  ;;  %v251_v55 = vpack.c.bf16 %v241_v53, %v240_v52  ;;  %v242_v56 = vld [vmem:[%s3141_s6 + $0x70] sm:$0xff]  ;;  %v243_v57 = vld [vmem:[%s3141_s6 + $0x78] sm:$0xff]  ;;  %v1973_v60 = vld [vmem:[%s3142_s30] ss:$0 sm:$0xff] }
  0x18   :  { %v252_v58 = vpack.c.bf16 %v243_v57, %v242_v56  ;;  %v2283_v6 = vld [vmem:[%s3143_s13] ss:$8 sps:$4 sm:$0xff]   ;;  %v2285_v7 = vld [vmem:[%s3143_s13 + $0x4] ss:$8 sps:$4 sm:$0xff]   ;;  %v2288_v8 = vld [vmem:[%s3143_s13 + $0x14] ss:$8 sps:$4 sm:$0xff]  }
  0x19   :  { %v2286_v10 = vld [vmem:[%s3143_s13 + $0x10] ss:$8 sps:$4 sm:$0xff]   ;;  %v1959_v11 = vld [vmem:[%s3100_s7] ss:$0 sm:$0xff] }
  0x8c   :  { %v524_v18 = vpop.permute.xlu0 %523 }
  0x8d   :  { %v537_v20 = vmul.f32 %v1972_v19, %v524_v18 }
  0x90   :  { %v529_v21 = vpop.permute.xlu0 %528 }
  0x91   :  { %v538_v22 = vmul.f32 %v1972_v19, %v529_v21 }
  0x93   :  { %v539_v23 = vpack.c.bf16 %v538_v22, %v537_v20  ;;  %v2682_v20 = vld [vmem:[%s3101_s9] ss:$0 sm:$0xff] }
  0x95   :  { %2185 = vmatpush3.bf16.msra.mxu1 %v539_v23 }
  0x96   :  { %2190 = vmatprep.subr.bf16.mxu1 %v2412_v0 }
  0x98   :  { %2187 = vmatmul.mubr.msk.bf16.vlgmr.msra.gmra.mrb[0].mxu1 %vm552_vm6, %v2592_v24 }
  0x99   :  { %2192 = vmatprep.mubr.msk.bf16.mxu1 %vm2414_vm2, %v2412_v0 }
  0xe3   :  { %v148_v26 = vpop.f32.mrb[0].mxu0 }
  0xe4   :  { %v149_v27 = vadd.f32 %v1956_v25, %v148_v26  ;;  %v2156_v28 = vpop.f32.mrb[1].mxu0 }
  0xe5   :  { %v151_v29 = vpop.f32.mrb[2].mxu0 }
  0xe6   :  { %v152_v30 = vadd.f32 %v1956_v25, %v151_v29  ;;  %v2157_v31 = vpop.f32.mrb[3].mxu0  ;;  %v155_v34 = vmax.f32 %v149_v27, 0.0 }
  0xe8   :  { %v156_v35 = vmax.f32 %v152_v30, 0.0 }
  0xea   :  { %v161_v37 = vpack.c.bf16 %v156_v35, %v155_v34 }
  0xec   :  { %2163 = vmatmul.mubr.msk.bf16.vlgmr.msra.gmra.mrb[4].mxu0 %vm181_vm7, %v161_v37 }
  0xed   :  { %2167 = vmatpush3.bf16.msra.mxu0 %v290_v17  ;;  %2168 = vmatprep.mubr.msk.bf16.mxu0 %vm260_vm8, %v245_v36 }
  0xee   :  { %814 = vmatprep.subr.bf16.mxu0 %v2285_v7 }
  0xf4   :  { %2169 = vmatmul.mubr.msk.bf16.vlgmr.msra.gmra.mrb[8].mxu0 %vm260_vm8, %v246_v42 }
  0xf5   :  { %2172 = vmatprep.mubr.msk.bf16.mxu0 %vm260_vm8, %v247_v43  ;;  %815 = vmatpush1.bf16.msra.mxu0 %v2283_v6 }
  0xf6   :  { %816 = vmatprep.subr.bf16.mxu0 %v2288_v8 }
  0xf9   :  { %817 = vmatpush1.bf16.msra.mxu0 %v2286_v10 }
  0xfc   :  { %2173 = vmatmul.mubr.msk.bf16.gmra.mrb[12].mxu0 %vm260_vm8, %v248_v48 }
  0xfd   :  { %2176 = vmatprep.mubr.msk.bf16.mxu0 %vm260_vm8, %v249_v49 }
 0x104   :  { %2177 = vmatmul.mubr.msk.bf16.gmra.mrb[16].mxu0 %vm260_vm8, %v250_v54 }
 0x105   :  { %2180 = vmatprep.mubr.msk.bf16.mxu0 %vm260_vm8, %v251_v55 }
 0x10c   :  { %2181 = vmatmul.mubr.msk.bf16.gmra.mrb[20].mxu0 %vm260_vm8, %v252_v58 }
 0x10d   :  { %846 = vmatprep.mubr.bf16.mxu0 %v2415_v9 }
 0x16b   :  { %v590_v59 = vpop.f32.mrb[0].mxu1 }
 0x16c   :  { %v2188_v61 = vpop.f32.mrb[1].mxu1  ;;  %v591_v62 = vadd.f32 %v1973_v60, %v590_v59 }
 0x16d   :  { %v593_v63 = vpop.f32.mrb[2].mxu1 }
 0x16e   :  { %v594_v1 = vadd.f32 %v1973_v60, %v593_v63  ;;  %v2189_v2 = vpop.f32.mrb[3].mxu1  ;;  %v597_v3 = vmax.f32 %v591_v62, 0.0 }
 0x170   :  { %v598_v4 = vmax.f32 %v594_v1, 0.0 }
 0x172   :  { %v2662_v5 = vpack.c.bf16 %v598_v4, %v597_v3 }
 0x1bf   :  { %v219_v12 = vpop.f32.mrb[4].mxu0 }
 0x1c0   :  { %v220_v13 = vadd.f32 %v1959_v11, %v219_v12  ;;  %v2164_v14 = vpop.f32.mrb[5].mxu0 }
 0x1c1   :  { %v222_v15 = vpop.f32.mrb[6].mxu0 }
 0x1c2   :  { %v223_v16 = vadd.f32 %v1959_v11, %v222_v15  ;;  %v2165_v17 = vpop.f32.mrb[7].mxu0  ;;  %v226_v18 = vmax.f32 %v220_v13, 0.0 }
 0x1c4   :  { %v227_v19 = vmax.f32 %v223_v16, 0.0 }
 0x1c6   :  { %v599_v21 = vpack.c.bf16 %v227_v19, %v226_v18 }
 0x1c7   :  { %v2170_v22 = vpop.f32.mrb[8].mxu0 }
 0x1c8   :  { %v335_v23 = vadd.f32 %v2170_v22, %v2682_v20  ;;  %v326_v25 = vpop.f32.mrb[9].mxu0  ;;  %2191 = vmatpush3.bf16.msra.mxu1 %v599_v21 }
 0x1c9   :  { %v327_v26 = vadd.f32 %v2682_v20, %v326_v25  ;;  %v2171_v27 = vpop.f32.mrb[10].mxu0  ;;  %2196 = vmatprep.subr.bf16.mxu1 %v2412_v0 }
 0x1ca   :  { %v391_v28 = vmax.f32 %v335_v23, 0.0  ;;  %v338_v29 = vadd.f32 %v2171_v27, %v2682_v20  ;;  %v329_v30 = vpop.f32.mrb[11].mxu0 }
 0x1cb   :  { %v389_v31 = vmax.f32 %v327_v26, 0.0  ;;  %v330_v32 = vadd.f32 %v2682_v20, %v329_v30  ;;  %2193 = vmatmul.mubr.msk.bf16.vlgmr.msra.gmra.mrb[4].mxu1 %vm552_vm6, %v2592_v24 }
 0x1cc   :  { %v420_v33 = vsel %vm405_vm9, %v391_v28, -inf  ;;  %v392_v34 = vmax.f32 %v338_v29, 0.0  ;;  %2198 = vmatprep.mubr.msk.bf16.mxu1 %vm2414_vm2, %v2412_v0 }
 0x1cd   :  { %v421_v35 = vrot.slane %v420_v33, 4  ;;  %v406_v36 = vsel %vm405_vm9, %v389_v31, -inf  ;;  %v390_v37 = vmax.f32 %v330_v32, 0.0 }
 0x1ce   :  { %v407_v38 = vrot.slane %v406_v36, 4  ;;  %v427_v39 = vsel %vm405_vm9, %v392_v34, -inf }
 0x1cf   :  { %v422_v40 = vmax.f32 %v420_v33, %v421_v35  ;;  %v428_v41 = vrot.slane %v427_v39, 4  ;;  %v413_v42 = vsel %vm405_vm9, %v390_v37, -inf  ;;  %v2174_v43 = vpop.f32.mrb[12].mxu0 }
 0x1d0   :  { %v408_v44 = vmax.f32 %v406_v36, %v407_v38  ;;  %v414_v45 = vrot.slane %v413_v42, 4  ;;  %v351_v46 = vadd.f32 %v2174_v43, %v2682_v20  ;;  %v342_v47 = vpop.f32.mrb[13].mxu0 }
 0x1d1   :  { %v423_v48 = vrot.slane %v422_v40, 2  ;;  %v429_v49 = vmax.f32 %v427_v39, %v428_v41  ;;  %v343_v50 = vadd.f32 %v2682_v20, %v342_v47  ;;  %v2175_v51 = vpop.f32.mrb[14].mxu0 }
 0x1d2   :  { %v409_v52 = vrot.slane %v408_v44, 2  ;;  %v415_v53 = vmax.f32 %v413_v42, %v414_v45  ;;  %v395_v54 = vmax.f32 %v351_v46, 0.0  ;;  %v354_v55 = vadd.f32 %v2175_v51, %v2682_v20  ;;  %v345_v56 = vpop.f32.mrb[15].mxu0 }
 0x1d3   :  { %v424_v57 = vmax.f32 %v422_v40, %v423_v48  ;;  %v430_v58 = vrot.slane %v429_v49, 2  ;;  %v393_v59 = vmax.f32 %v343_v50, 0.0  ;;  %v346_v60 = vadd.f32 %v2682_v20, %v345_v56 }
 0x1d4   :  { %v410_v61 = vmax.f32 %v408_v44, %v409_v52  ;;  %v416_v62 = vrot.slane %v415_v53, 2  ;;  %v448_v63 = vsel %vm405_vm9, %v395_v54, -inf  ;;  %v396_v1 = vmax.f32 %v354_v55, 0.0 }
 0x1d5   :  { %v425_v2 = vrot.slane %v424_v57, 1  ;;  %v431_v3 = vmax.f32 %v429_v49, %v430_v58  ;;  %v449_v4 = vrot.slane %v448_v63, 4  ;;  %v434_v6 = vsel %vm405_vm9, %v393_v59, -inf }
 0x1d6   :  { %v411_v7 = vrot.slane %v410_v61, 1  ;;  %v417_v8 = vmax.f32 %v415_v53, %v416_v62  ;;  %v435_v10 = vrot.slane %v434_v6, 4  ;;  %v455_v11 = vsel %vm405_vm9, %v396_v1, -inf }
 0x1d7   :  { %v426_v12 = vmax.f32 %v424_v57, %v425_v2  ;;  %v432_v13 = vrot.slane %v431_v3, 1  ;;  %v450_v14 = vmax.f32 %v448_v63, %v449_v4  ;;  %v456_v15 = vrot.slane %v455_v11, 4  ;;  %v2178_v16 = vpop.f32.mrb[16].mxu0 }
 0x1d8   :  { %v412_v17 = vmax.f32 %v410_v61, %v411_v7  ;;  %v418_v18 = vrot.slane %v417_v8, 1  ;;  %v436_v19 = vmax.f32 %v434_v6, %v435_v10  ;;  %v394_v21 = vmax.f32 %v346_v60, 0.0  ;;  %v358_v22 = vpop.f32.mrb[17].mxu0 }
 0x1d9   :  { %v652_v23 = vpack.c.bf16 %v426_v12, %v426_v12  ;;  %v433_v25 = vmax.f32 %v431_v3, %v432_v13  ;;  %v451_v26 = vrot.slane %v450_v14, 2  ;;  %v457_v27 = vmax.f32 %v455_v11, %v456_v15  ;;  %v2179_v28 = vpop.f32.mrb[18].mxu0 }
 0x1da   :  { %v650_v29 = vpack.c.bf16 %v412_v17, %v412_v17  ;;  %v419_v30 = vmax.f32 %v417_v8, %v418_v18  ;;  %v437_v31 = vrot.slane %v436_v19, 2  ;;  %v441_v32 = vsel %vm405_vm9, %v394_v21, -inf  ;;  %v361_v33 = vpop.f32.mrb[19].mxu0 }
 0x1db   :  { %v653_v34 = vpack.c.bf16 %v433_v25, %v433_v25  ;;  %v452_v35 = vmax.f32 %v450_v14, %v451_v26  ;;  %v458_v36 = vrot.slane %v457_v27, 2  ;;  %v684_v37 = vunpack.c.l.b16 %v652_v23 }
 0x1dc   :  { %v651_v38 = vpack.c.bf16 %v419_v30, %v419_v30  ;;  %v438_v39 = vmax.f32 %v436_v19, %v437_v31  ;;  %v442_v40 = vrot.slane %v441_v32, 4  ;;  %v682_v41 = vunpack.c.l.b16 %v650_v29 }
 0x1dd   :  { %v453_v42 = vrot.slane %v452_v35, 1  ;;  %v459_v43 = vmax.f32 %v457_v27, %v458_v36  ;;  %v367_v44 = vadd.f32 %v2178_v16, %v2682_v20  ;;  %v359_v48 = vadd.f32 %v2682_v20, %v358_v22 }
 0x1de   :  { %v683_v45 = vunpack.c.l.b16 %v651_v38  ;;  %v439_v46 = vrot.slane %v438_v39, 1  ;;  %v443_v47 = vmax.f32 %v441_v32, %v442_v40  ;;  %v685_v49 = vunpack.c.l.b16 %v653_v34 }
 0x1df   :  { %v2707_v50 = vmax.f32 %v452_v35, %v453_v42  ;;  %v399_v51 = vmax.f32 %v367_v44, 0.0  ;;  %v370_v52 = vadd.f32 %v2179_v28, %v2682_v20  ;;  %v2182_v53 = vpop.f32.mrb[20].mxu0  ;;  %v397_v57 = vmax.f32 %v359_v48, 0.0 }
 0x1e0   :  { %v699_v54 = vsel %vm698_vm10, %v683_v45, %v682_v41  ;;  %v440_v55 = vmax.f32 %v438_v39, %v439_v46  ;;  %v444_v56 = vrot.slane %v443_v47, 2  ;;  %v374_v58 = vpop.f32.mrb[21].mxu0  ;;  %v460_v60 = vrot.slane %v459_v43, 1 }
 0x1e1   :  { %v701_v59 = vsel %vm700_vm11, %v684_v37, %v699_v54  ;;  %v476_v61 = vsel %vm405_vm9, %v399_v51, -inf  ;;  %v2183_v62 = vpop.f32.mrb[22].mxu0  ;;  %v656_v6 = vpack.c.bf16 %v2707_v50, %v2707_v50  ;;  %v462_v7 = vsel %vm405_vm9, %v397_v57, -inf }
 0x1e2   :  { %v654_v63 = vpack.c.bf16 %v440_v55, %v440_v55  ;;  %v703_v1 = vsel %vm702_vm12, %v685_v49, %v701_v59  ;;  %v445_v2 = vmax.f32 %v443_v47, %v444_v56  ;;  %v477_v3 = vrot.slane %v476_v61, 4  ;;  %v377_v4 = vpop.f32.mrb[23].mxu0 }
 0x1e3   :  { %v400_v8 = vmax.f32 %v370_v52, 0.0  ;;  %v463_v13 = vrot.slane %v462_v7, 4  ;;  %v461_v14 = vmax.f32 %v459_v43, %v460_v60  ;;  %v362_v16 = vadd.f32 %v2682_v20, %v361_v33 }
 0x1e4   :  { %v686_v10 = vunpack.c.l.b16 %v654_v63  ;;  %v446_v11 = vrot.slane %v445_v2, 1  ;;  %v478_v12 = vmax.f32 %v476_v61, %v477_v3  ;;  %v383_v17 = vadd.f32 %v2182_v53, %v2682_v20 }
 0x1e5   :  { %v483_v15 = vsel %vm405_vm9, %v400_v8, -inf  ;;  %v464_v22 = vmax.f32 %v462_v7, %v463_v13  ;;  %v398_v25 = vmax.f32 %v362_v16, 0.0  ;;  %v375_v27 = vadd.f32 %v2682_v20, %v374_v58 }
 0x1e6   :  { %v705_v18 = vsel %vm704_vm13, %v686_v10, %v703_v1  ;;  %v447_v19 = vmax.f32 %v445_v2, %v446_v11  ;;  %v479_v21 = vrot.slane %v478_v12, 2  ;;  %v484_v23 = vrot.slane %v483_v15, 4 }
 0x1e7   :  { %v403_v26 = vmax.f32 %v383_v17, 0.0  ;;  %v465_v30 = vrot.slane %v464_v22, 2  ;;  %v386_v31 = vadd.f32 %v2183_v62, %v2682_v20  ;;  %v469_v33 = vsel %vm405_vm9, %v398_v25, -inf }
 0x1e8   :  { %v655_v28 = vpack.c.bf16 %v447_v19, %v447_v19  ;;  %v480_v29 = vmax.f32 %v478_v12, %v479_v21  ;;  %v485_v32 = vmax.f32 %v483_v15, %v484_v23  ;;  %v401_v35 = vmax.f32 %v375_v27, 0.0 }
 0x1e9   :  { %v504_v34 = vsel %vm405_vm9, %v403_v26, -inf  ;;  %v657_v36 = vpack.c.bf16 %v461_v14, %v461_v14  ;;  %v466_v38 = vmax.f32 %v464_v22, %v465_v30  ;;  %v470_v39 = vrot.slane %v469_v33, 4 }
 0x1ea   :  { %v481_v37 = vrot.slane %v480_v29, 1  ;;  %v486_v40 = vrot.slane %v485_v32, 2  ;;  %v505_v41 = vrot.slane %v504_v34, 4  ;;  %v490_v42 = vsel %vm405_vm9, %v401_v35, -inf }
 0x1eb   :  { %v404_v43 = vmax.f32 %v386_v31, 0.0  ;;  %v687_v44 = vunpack.c.l.b16 %v655_v28  ;;  %v467_v45 = vrot.slane %v466_v38, 1  ;;  %v471_v46 = vmax.f32 %v469_v33, %v470_v39 }
 0x1ec   :  { %v491_v47 = vrot.slane %v490_v42, 4  ;;  %v487_v48 = vmax.f32 %v485_v32, %v486_v40  ;;  %v506_v49 = vmax.f32 %v504_v34, %v505_v41  ;;  %v378_v51 = vadd.f32 %v2682_v20, %v377_v4 }
 0x1ed   :  { %v511_v50 = vsel %vm405_vm9, %v404_v43, -inf  ;;  %v482_v52 = vmax.f32 %v480_v29, %v481_v37  ;;  %v468_v53 = vmax.f32 %v466_v38, %v467_v45  ;;  %v472_v54 = vrot.slane %v471_v46, 2 }
 0x1ee   :  { %v492_v55 = vmax.f32 %v490_v42, %v491_v47  ;;  %v488_v56 = vrot.slane %v487_v48, 1  ;;  %v507_v57 = vrot.slane %v506_v49, 2  ;;  %v512_v58 = vrot.slane %v511_v50, 4 }
 0x1ef   :  { %v402_v59 = vmax.f32 %v378_v51, 0.0  ;;  %v688_v60 = vunpack.c.l.b16 %v656_v6  ;;  %v473_v61 = vmax.f32 %v471_v46, %v472_v54  ;;  %v689_v7 = vunpack.c.l.b16 %v657_v36  ;;  %v2292_v54 = vld [vmem:[%s3143_s13 + $0x30] ss:$8 sps:$4 sm:$0xff]  }
 0x1f0   :  { %v493_v62 = vrot.slane %v492_v55, 2  ;;  %v489_v63 = vmax.f32 %v487_v48, %v488_v56  ;;  %v508_v1 = vmax.f32 %v506_v49, %v507_v57  ;;  %v513_v2 = vmax.f32 %v511_v50, %v512_v58 }
 0x1f1   :  { %v497_v3 = vsel %vm405_vm9, %v402_v59, -inf  ;;  %v474_v8 = vrot.slane %v473_v61, 1  ;;  %v660_v10 = vpack.c.bf16 %v482_v52, %v482_v52  ;;  %v658_v11 = vpack.c.bf16 %v468_v53, %v468_v53  ;;  %v2289_v52 = vld [vmem:[%s3143_s13 + $0x20] ss:$8 sps:$4 sm:$0xff]   ;;  %v2291_v53 = vld [vmem:[%s3143_s13 + $0x24] ss:$8 sps:$4 sm:$0xff]  }
 0x1f2   :  { %v494_v20 = vmax.f32 %v492_v55, %v493_v62  ;;  %v498_v4 = vrot.slane %v497_v3, 4  ;;  %v514_v12 = vrot.slane %v513_v2, 2  ;;  %v707_v13 = vsel %vm706_vm14, %v687_v44, %v705_v18  ;;  %818 = vmatprep.subr.bf16.mxu0 %v2291_v53  ;;  %v2297_v55 = vld [vmem:[%s3102_s12 + $0x4] ss:$8 sps:$4 sm:$0xff]  }
 0x1f3   :  { %v475_v14 = vmax.f32 %v473_v61, %v474_v8  ;;  %v709_v16 = vsel %vm708_vm15, %v688_v60, %v707_v13  ;;  %v661_v17 = vpack.c.bf16 %v489_v63, %v489_v63  ;;  %v509_v19 = vrot.slane %v508_v1, 1  ;;  %819 = vmatpush1.bf16.msra.mxu0 %v2289_v52  ;;  %v2298_v8 = vld [vmem:[%s3102_s12 + $0x10] ss:$8 sps:$4 sm:$0xff]   ;;  %v2306_v13 = vld [vmem:[%s3102_s12 + $0x34] ss:$8 sps:$4 sm:$0xff]  }
 0x1f4   :  { %v495_v15 = vrot.slane %v494_v20, 1  ;;  %v499_v6 = vmax.f32 %v497_v3, %v498_v4  ;;  %v515_v21 = vmax.f32 %v513_v2, %v514_v12  ;;  %v711_v22 = vsel %vm710_vm0, %v689_v7, %v709_v16  ;;  %v2300_v7 = vld [vmem:[%s3102_s12 + $0x14] ss:$8 sps:$4 sm:$0xff]   ;;  %v2309_v16 = vld [vmem:[%s3103_s14 + $0x4] ss:$8 sps:$4 sm:$0xff]  }
 0x1f5   :  { %v659_v23 = vpack.c.bf16 %v475_v14, %v475_v14  ;;  %v690_v28 = vunpack.c.l.b16 %v658_v11  ;;  %v692_v32 = vunpack.c.l.b16 %v660_v10  ;;  %v693_v18 = vunpack.c.l.b16 %v661_v17  ;;  %v2301_v11 = vld [vmem:[%s3102_s12 + $0x20] ss:$8 sps:$4 sm:$0xff]   ;;  %v2328_v52 = vld [vmem:[%s3104_s16 + $0x30] ss:$8 sps:$4 sm:$0xff]   ;;  %v2333_v53 = vld [vmem:[%s3104_s16 + $0x44] ss:$8 sps:$4 sm:$0xff]  }
 0x1f6   :  { %v496_v25 = vmax.f32 %v494_v20, %v495_v15  ;;  %v500_v26 = vrot.slane %v499_v6, 2  ;;  %v516_v27 = vrot.slane %v515_v21, 1  ;;  %v510_v33 = vmax.f32 %v508_v1, %v509_v19  ;;  %v2295_v1 = vld [vmem:[%s3102_s12] ss:$8 sps:$4 sm:$0xff]   ;;  %v2303_v20 = vld [vmem:[%s3102_s12 + $0x24] ss:$8 sps:$4 sm:$0xff]  }
 0x1f7   :  { %v691_v29 = vunpack.c.l.b16 %v659_v23  ;;  %v2307_v17 = vld [vmem:[%s3103_s14] ss:$8 sps:$4 sm:$0xff]   ;;  %v2312_v19 = vld [vmem:[%s3103_s14 + $0x14] ss:$8 sps:$4 sm:$0xff]  }
 0x1f8   :  { %v662_v30 = vpack.c.bf16 %v496_v25, %v496_v25  ;;  %v501_v31 = vmax.f32 %v499_v6, %v500_v26  ;;  %v517_v36 = vmax.f32 %v515_v21, %v516_v27  ;;  %v664_v41 = vpack.c.bf16 %v510_v33, %v510_v33  ;;  %v2304_v6 = vld [vmem:[%s3102_s12 + $0x30] ss:$8 sps:$4 sm:$0xff]   ;;  %v2313_v23 = vld [vmem:[%s3103_s14 + $0x20] ss:$8 sps:$4 sm:$0xff]   ;;  %v2318_v25 = vld [vmem:[%s3103_s14 + $0x34] ss:$8 sps:$4 sm:$0xff]  }
 0x1f9   :  { %v712_v34 = vsel %vm698_vm10, %v691_v29, %v690_v28  ;;  %v2310_v21 = vld [vmem:[%s3103_s14 + $0x10] ss:$8 sps:$4 sm:$0xff]   ;;  %v1086_v26 = vlaneseq  ;;  %v1084_v29 = vld [vmem:[%s3105_s15] sm:$0x3] }
 0x1fa   :  { %v694_v35 = vunpack.c.l.b16 %v662_v30  ;;  %v502_v37 = vrot.slane %v501_v31, 1  ;;  %v713_v38 = vsel %vm700_vm11, %v692_v32, %v712_v34  ;;  %v665_v43 = vpack.c.bf16 %v517_v36, %v517_v36 }
 0x1fb   :  { %v714_v39 = vsel %vm702_vm12, %v693_v18, %v713_v38  ;;  %v696_v46 = vunpack.c.l.b16 %v664_v41  ;;  %v2813_v27 = vshrl.u32 %v1086_v26, 7  ;;  %v2377_v26 = vld [vmem:[%s3106_s18 + $0x68] sm:$0xff]  }
 0x1fc   :  { %v503_v40 = vmax.f32 %v501_v31, %v502_v37  ;;  %v715_v42 = vsel %vm704_vm13, %v694_v35, %v714_v39  ;;  %v697_v47 = vunpack.c.l.b16 %v665_v43 }
 0x1fd   :  { %v1088_v28 = vsub.s32 0, %v2813_v27  ;;  %v1092_v30 = vsub.s32 1, %v2813_v27  ;;  %v2383_v27 = vld [vmem:[%s3108_s20] sm:$0xff]  }
 0x1fe   :  { %v663_v44 = vpack.c.bf16 %v503_v40, %v503_v40 }
 0x1ff   :  { %v1089_v31 = vrot.slane %v1084_v29, %v1088_v28  ;;  %v1093_v32 = vrot.slane %v1084_v29, %v1092_v30 }
 0x200   :  { %v695_v45 = vunpack.c.l.b16 %v663_v44 }
 0x202   :  { %v716_v48 = vsel %vm706_vm14, %v695_v45, %v715_v42 }
 0x203   :  { %v717_v49 = vsel %vm708_vm15, %v696_v46, %v716_v48  ;;  %v2321_v46 = vld [vmem:[%s3104_s16 + $0x4] ss:$8 sps:$4 sm:$0xff]   ;;  %v2324_v48 = vld [vmem:[%s3104_s16 + $0x14] ss:$8 sps:$4 sm:$0xff]  }
 0x204   :  { %v718_v50 = vsel %vm710_vm0, %v697_v47, %v717_v49  ;;  %v2319_v47 = vld [vmem:[%s3104_s16] ss:$8 sps:$4 sm:$0xff]   ;;  %v2322_v49 = vld [vmem:[%s3104_s16 + $0x10] ss:$8 sps:$4 sm:$0xff]  }
 0x205   :  { %v719_v51 = vpack.c.b16 %v718_v50, %v711_v22  ;;  %v2315_v22 = vld [vmem:[%s3103_s14 + $0x24] ss:$8 sps:$4 sm:$0xff]  }
 0x206   :  { %v2327_v50 = vld [vmem:[%s3104_s16 + $0x24] ss:$8 sps:$4 sm:$0xff]  }
 0x207   :  { %2197 = vmatpush3.bf16.msra.mxu1 %v719_v51  ;;  %v2325_v51 = vld [vmem:[%s3104_s16 + $0x20] ss:$8 sps:$4 sm:$0xff]  }
 0x208   :  { %2202 = vmatprep.subr.bf16.mxu1 %v2412_v0 }
 0x20a   :  { %2199 = vmatmul.mubr.msk.bf16.vlgmr.msra.gmra.mrb[8].mxu1 %vm552_vm6, %v2592_v24 }
 0x20b   :  { %2203 = vmatpush3.bf16.msra.mxu1 %v2662_v5  ;;  %2204 = vmatprep.mubr.msk.bf16.mxu1 %vm2414_vm2, %v2412_v0  ;;  %v2294_v5 = vld [vmem:[%s3143_s13 + $0x34] ss:$8 sps:$4 sm:$0xff]  }
 0x20c   :  { %820 = vmatprep.subr.bf16.mxu0 %v2294_v5  ;;  %v2331_v5 = vld [vmem:[%s3104_s16 + $0x40] ss:$8 sps:$4 sm:$0xff]  }
 0x20d   :  { %821 = vmatpush1.bf16.msra.mxu0 %v2292_v54  ;;  %v2336_v54 = vld [vmem:[%s3104_s16 + $0x54] ss:$8 sps:$4 sm:$0xff]  }
 0x20e   :  { %900 = vmatprep.subr.bf16.mxu0 %v2297_v55  ;;  %v2334_v55 = vld [vmem:[%s3104_s16 + $0x50] ss:$8 sps:$4 sm:$0xff]  }
 0x212   :  { %2205 = vmatmul.mubr.msk.bf16.vlgmr.msra.gmra.mrb[12].mxu1 %vm552_vm6, %v2592_v24 }
 0x213   :  { %1138 = vmatprep.mubr.bf16.mxu1 %v2415_v9 }
 0x29e   :  { %v634_v56 = vpop.f32.mrb[4].mxu1 }
 0x29f   :  { %v2194_v57 = vpop.f32.mrb[5].mxu1 }
 0x2a0   :  { %v637_v58 = vpop.f32.mrb[6].mxu1  ;;  %v2337_v57 = vld [vmem:[%s3104_s16 + $0x60] ss:$8 sps:$4 sm:$0xff]  }
 0x2a1   :  { %v649_v59 = vpack.c.bf16 %v637_v58, %v634_v56  ;;  %v2195_v60 = vpop.f32.mrb[7].mxu1  ;;  %v2339_v56 = vld [vmem:[%s3104_s16 + $0x64] ss:$8 sps:$4 sm:$0xff]   ;;  %v2342_v58 = vld [vmem:[%s3104_s16 + $0x74] ss:$8 sps:$4 sm:$0xff]  }
 0x2a2   :  { %v2345_v60 = vld [vmem:[%s3104_s16 + $0x84] ss:$8 sps:$4 sm:$0xff]  }
 0x2dd   :  { %v755_v61 = vpop.f32.mrb[8].mxu1 }
 0x2de   :  { %v2200_v62 = vpop.f32.mrb[9].mxu1 }
 0x2df   :  { %v758_v63 = vpop.f32.mrb[10].mxu1  ;;  %v2348_v62 = vld [vmem:[%s3104_s16 + $0x94] ss:$8 sps:$4 sm:$0xff]  }
 0x2e0   :  { %v770_v2 = vpack.c.bf16 %v758_v63, %v755_v61  ;;  %v2201_v3 = vpop.f32.mrb[11].mxu1  ;;  %v2343_v61 = vld [vmem:[%s3104_s16 + $0x80] ss:$8 sps:$4 sm:$0xff]   ;;  %v2346_v63 = vld [vmem:[%s3104_s16 + $0x90] ss:$8 sps:$4 sm:$0xff]  }
 0x2e1   :  { %v2354_v3 = vld [vmem:[%s3104_s16 + $0xb4] ss:$8 sps:$4 sm:$0xff]  }
 0x2e2   :  { %1986 = vmatmul.mubr.msk.bf16.vlgmr.msra.gmra.mrb[24].mxu0 %vm405_vm9, %v770_v2  ;;  %v2349_v2 = vld [vmem:[%s3104_s16 + $0xa0] ss:$8 sps:$4 sm:$0xff]  }
 0x2e3   :  { %901 = vmatpush1.bf16.msra.mxu0 %v2295_v1  ;;  %932 = vmatprep.mubr.bf16.mxu0 %v2415_v9  ;;  %v2351_v1 = vld [vmem:[%s3104_s16 + $0xa4] ss:$8 sps:$4 sm:$0xff]  }
 0x2e4   :  { %902 = vmatprep.subr.bf16.mxu0 %v2300_v7  ;;  %v2352_v7 = vld [vmem:[%s3104_s16 + $0xb0] ss:$8 sps:$4 sm:$0xff]  }
 0x2e5   :  { %v978_v4 = vpop.f32.mrb[12].mxu1 }
 0x2e6   :  { %v2206_v10 = vpop.f32.mrb[13].mxu1 }
 0x2e7   :  { %903 = vmatpush1.bf16.msra.mxu0 %v2298_v8  ;;  %v981_v12 = vpop.f32.mrb[14].mxu1  ;;  %v2357_v8 = vld [vmem:[%s3104_s16 + $0xc4] ss:$8 sps:$4 sm:$0xff]   ;;  %v2358_v10 = vld [vmem:[%s3104_s16 + $0xd0] ss:$8 sps:$4 sm:$0xff]  }
 0x2e8   :  { %904 = vmatprep.subr.bf16.mxu0 %v2303_v20  ;;  %v993_v14 = vpack.c.bf16 %v981_v12, %v978_v4  ;;  %v2207_v15 = vpop.f32.mrb[15].mxu1  ;;  %v2355_v20 = vld [vmem:[%s3104_s16 + $0xc0] ss:$8 sps:$4 sm:$0xff]   ;;  %v2360_v4 = vld [vmem:[%s3104_s16 + $0xd4] ss:$8 sps:$4 sm:$0xff]  }
 0x2e9   :  { %v2361_v12 = vld [vmem:[%s3104_s16 + $0xe0] ss:$8 sps:$4 sm:$0xff]  }
 0x2ea   :  { %v2367_v15 = vld [vmem:[%s3106_s18 + $0x40] sm:$0xff]  }
 0x2eb   :  { %905 = vmatpush1.bf16.msra.mxu0 %v2301_v11  ;;  %v2363_v11 = vld [vmem:[%s3104_s16 + $0xe4] ss:$8 sps:$4 sm:$0xff]  }
 0x2ec   :  { %906 = vmatprep.subr.bf16.mxu0 %v2306_v13  ;;  %v2366_v13 = vld [vmem:[%s3104_s16 + $0xf4] ss:$8 sps:$4 sm:$0xff]  }
 0x2ef   :  { %907 = vmatpush1.bf16.msra.mxu0 %v2304_v6  ;;  %v2368_v6 = vld [vmem:[%s3106_s18] sm:$0xff]  }
 0x2f0   :  { %1037 = vmatprep.subr.bf16.mxu0 %v2309_v16  ;;  %v2369_v16 = vld [vmem:[%s3106_s18 + $0x48] sm:$0xff]  }
 0x2f2   :  { %1995 = vmatmul.mubr.msk.bf16.vlgmr.msra.gmra.mrb[24].mxu0 %vm405_vm9, %v649_v59  ;;  %v2340_v59 = vld [vmem:[%s3104_s16 + $0x70] ss:$8 sps:$4 sm:$0xff]  }
 0x2f3   :  { %1038 = vmatpush1.bf16.msra.mxu0 %v2307_v17  ;;  %1069 = vmatprep.mubr.bf16.mxu0 %v2415_v9  ;;  %v2316_v9 = vld [vmem:[%s3103_s14 + $0x30] ss:$8 sps:$4 sm:$0xff]   ;;  %v2370_v17 = vld [vmem:[%s3106_s18 + $0x8] sm:$0xff]  }
 0x2f4   :  { %1039 = vmatprep.subr.bf16.mxu0 %v2312_v19  ;;  %v2371_v19 = vld [vmem:[%s3106_s18 + $0x50] sm:$0xff]  }
 0x2f7   :  { %1040 = vmatpush1.bf16.msra.mxu0 %v2310_v21  ;;  %v2372_v21 = vld [vmem:[%s3106_s18 + $0x10] sm:$0xff]  }
 0x2f8   :  { %1041 = vmatprep.subr.bf16.mxu0 %v2315_v22  ;;  %v2373_v22 = vld [vmem:[%s3106_s18 + $0x58] sm:$0xff]  }
 0x2fb   :  { %1042 = vmatpush1.bf16.msra.mxu0 %v2313_v23  ;;  %v2374_v23 = vld [vmem:[%s3106_s18 + $0x18] sm:$0xff]  }
 0x2fc   :  { %1043 = vmatprep.subr.bf16.mxu0 %v2318_v25  ;;  %v2375_v25 = vld [vmem:[%s3106_s18 + $0x60] sm:$0xff]  }
 0x2ff   :  { %1044 = vmatpush1.bf16.msra.mxu0 %v2316_v9  ;;  %v2376_v9 = vld [vmem:[%s3106_s18 + $0x20] sm:$0xff]  }
 0x300   :  { %2105 = vmatprep.subr.bf16.mxu0 %v2367_v15 }
 0x302   :  { %2005 = vmatmul.mubr.msk.bf16.vlgmr.msra.gmra.mrb[24].mxu0 %vm405_vm9, %v993_v14  ;;  %v2364_v14 = vld [vmem:[%s3104_s16 + $0xf0] ss:$8 sps:$4 sm:$0xff]  }
 0x303   :  { %2106 = vmatpush3.bf16.msra.mxu0 %v2368_v6 }
 0x304   :  { %2107 = vmatprep.subr.bf16.mxu0 %v2369_v16 }
 0x307   :  { %2108 = vmatpush3.bf16.msra.mxu0 %v2370_v17 }
 0x308   :  { %2109 = vmatprep.subr.bf16.mxu0 %v2371_v19 }
 0x30b   :  { %2110 = vmatpush3.bf16.msra.mxu0 %v2372_v21 }
 0x30c   :  { %2111 = vmatprep.subr.bf16.mxu0 %v2373_v22 }
 0x30f   :  { %2112 = vmatpush3.bf16.msra.mxu0 %v2374_v23 }
 0x310   :  { %2113 = vmatprep.subr.bf16.mxu0 %v2375_v25  ;;  %v2397_v25 = vld [vmem:[%s3109_s22 + $0x30] sm:$0xff]  }
 0x313   :  { %2114 = vmatpush3.bf16.msra.mxu0 %v2376_v9  ;;  %v2398_v9 = vld [vmem:[%s3109_s22 + $0x38] sm:$0xff]  }
 0x314   :  { %2115 = vmatprep.subr.bf16.mxu0 %v2377_v26  ;;  %v2399_v26 = vld [vmem:[%s3111_s24] sm:$0xff]  }
 0x3d5   :  { %v1071_v18 = vpop.f32.mrb[24].mxu0 }
 0x3d6   :  { %v1096_v33 = vadd.f32 %v1089_v31, %v1071_v18  ;;  %v1073_v34 = vpop.f32.mrb[25].mxu0 }
 0x3d7   :  { %v1097_v35 = vadd.f32 %v1093_v32, %v1073_v34  ;;  %v1075_v36 = vpop.f32.mrb[26].mxu0 }
 0x3d8   :  { %v1098_v37 = vadd.f32 %v1089_v31, %v1075_v36  ;;  %v1077_v38 = vpop.f32.mrb[27].mxu0  ;;  %v1100_v40 = vmax.f32 %v1096_v33, 0.0  ;;  %v2379_v36 = vld [vmem:[%s3106_s18 + $0x70] sm:$0xff]  }
 0x3d9   :  { %v1099_v39 = vadd.f32 %v1093_v32, %v1077_v38  ;;  %v1101_v42 = vmax.f32 %v1097_v35, 0.0  ;;  %v2378_v35 = vld [vmem:[%s3106_s18 + $0x28] sm:$0xff]   ;;  %v2381_v38 = vld [vmem:[%s3106_s18 + $0x78] sm:$0xff]  }
 0x3da   :  { %v1102_v41 = vmax.f32 %v1098_v37, 0.0  ;;  %2116 = vmatpush3.bf16.msra.mxu0 %v2378_v35  ;;  %v2380_v37 = vld [vmem:[%s3106_s18 + $0x30] sm:$0xff]  }
 0x3db   :  { %v1103_v43 = vmax.f32 %v1099_v39, 0.0  ;;  %2117 = vmatprep.subr.bf16.mxu0 %v2379_v36  ;;  %v2382_v39 = vld [vmem:[%s3106_s18 + $0x38] sm:$0xff]  }
 0x3dc   :  { %v1104_v44 = vpack.c.bf16 %v1102_v41, %v1100_v40  ;;  %v1183_v40 = vld [vmem:[%s3107_s17] sm:$0x3] }
 0x3dd   :  { %v1105_v45 = vpack.c.bf16 %v1103_v43, %v1101_v42  ;;  %v1188_v41 = vrot.slane %v1183_v40, %v1088_v28  ;;  %v1192_v42 = vrot.slane %v1183_v40, %v1092_v30  ;;  %v2384_v28 = vld [vmem:[%s3108_s20 + $0x8] sm:$0xff]   ;;  %v2385_v30 = vld [vmem:[%s3108_s20 + $0x10] sm:$0xff]  }
 0x3de   :  { %2118 = vmatpush3.bf16.msra.mxu0 %v2380_v37  ;;  %v2401_v40 = vld [vmem:[%s3111_s24 + $0x10] sm:$0xff]  }
 0x3df   :  { %1106 = vmatprep.subr.bf16.mxu1 %v1105_v45  ;;  %2119 = vmatprep.subr.bf16.mxu0 %v2381_v38 }
 0x3e0   :  { %1107 = vmatpush1.bf16.msra.mxu1 %v1104_v44 }
 0x3e1   :  { %1355 = vmatprep.subr.bf16.mxu1 %v2321_v46 }
 0x3e2   :  { %2120 = vmatpush3.bf16.msra.mxu0 %v2382_v39 }
 0x3e3   :  { %2006 = vmatmul.mubr.msk.bf16.vlgmr.msra.gmra.mrb[16].mxu1 %vm552_vm6, %v2592_v24  ;;  %v2330_v24 = vld [vmem:[%s3104_s16 + $0x34] ss:$8 sps:$4 sm:$0xff]   ;;  %2208 = vmatprep.subr.bf16.mxu0 %v2412_v0 }
 0x3e4   :  { %1356 = vmatpush1.bf16.msra.mxu1 %v2319_v47 }
 0x3e5   :  { %1357 = vmatprep.subr.bf16.mxu1 %v2324_v48 }
 0x3e8   :  { %1358 = vmatpush1.bf16.msra.mxu1 %v2322_v49 }
 0x3e9   :  { %1359 = vmatprep.subr.bf16.mxu1 %v2327_v50 }
 0x3ec   :  { %1360 = vmatpush1.bf16.msra.mxu1 %v2325_v51 }
 0x3ed   :  { %1361 = vmatprep.subr.bf16.mxu1 %v2330_v24 }
 0x3f0   :  { %1362 = vmatpush1.bf16.msra.mxu1 %v2328_v52 }
 0x3f1   :  { %1363 = vmatprep.subr.bf16.mxu1 %v2333_v53 }
 0x3f4   :  { %1364 = vmatpush1.bf16.msra.mxu1 %v2331_v5 }
 0x3f5   :  { %1365 = vmatprep.subr.bf16.mxu1 %v2336_v54 }
 0x3f8   :  { %1366 = vmatpush1.bf16.msra.mxu1 %v2334_v55  ;;  %v2386_v55 = vld [vmem:[%s3108_s20 + $0x18] sm:$0xff]  }
 0x3f9   :  { %1367 = vmatprep.subr.bf16.mxu1 %v2339_v56  ;;  %v2387_v56 = vld [vmem:[%s3108_s20 + $0x20] sm:$0xff]  }
 0x3fc   :  { %1368 = vmatpush1.bf16.msra.mxu1 %v2337_v57  ;;  %v2388_v57 = vld [vmem:[%s3108_s20 + $0x28] sm:$0xff]  }
 0x3fd   :  { %1369 = vmatprep.subr.bf16.mxu1 %v2342_v58 }
 0x400   :  { %1370 = vmatpush1.bf16.msra.mxu1 %v2340_v59 }
 0x401   :  { %1371 = vmatprep.subr.bf16.mxu1 %v2345_v60 }
 0x404   :  { %1372 = vmatpush1.bf16.msra.mxu1 %v2343_v61 }
 0x405   :  { %1373 = vmatprep.subr.bf16.mxu1 %v2348_v62 }
 0x408   :  { %1374 = vmatpush1.bf16.msra.mxu1 %v2346_v63 }
 0x409   :  { %1375 = vmatprep.subr.bf16.mxu1 %v2351_v1 }
 0x40c   :  { %1376 = vmatpush1.bf16.msra.mxu1 %v2349_v2  ;;  %v2411_v2 = vld [vmem:[%s3139_s10] sm:$0xff]  }
 0x40d   :  { %1377 = vmatprep.subr.bf16.mxu1 %v2354_v3  ;;  %v2389_v3 = vld [vmem:[%s3108_s20 + $0x30] sm:$0xff]  }
 0x410   :  { %1378 = vmatpush1.bf16.msra.mxu1 %v2352_v7  ;;  %v2390_v7 = vld [vmem:[%s3108_s20 + $0x38] sm:$0xff]  }
 0x411   :  { %1379 = vmatprep.subr.bf16.mxu1 %v2357_v8  ;;  %v2391_v8 = vld [vmem:[%s3109_s22] sm:$0xff]  }
 0x414   :  { %1380 = vmatpush1.bf16.msra.mxu1 %v2355_v20  ;;  %v2392_v20 = vld [vmem:[%s3109_s22 + $0x8] sm:$0xff]  }
 0x415   :  { %1381 = vmatprep.subr.bf16.mxu1 %v2360_v4  ;;  %v2393_v4 = vld [vmem:[%s3109_s22 + $0x10] sm:$0xff]  }
 0x418   :  { %1382 = vmatpush1.bf16.msra.mxu1 %v2358_v10  ;;  %v2394_v10 = vld [vmem:[%s3109_s22 + $0x18] sm:$0xff]  }
 0x419   :  { %1383 = vmatprep.subr.bf16.mxu1 %v2363_v11  ;;  %v2395_v11 = vld [vmem:[%s3109_s22 + $0x20] sm:$0xff]  }
 0x41c   :  { %1384 = vmatpush1.bf16.msra.mxu1 %v2361_v12  ;;  %v2396_v12 = vld [vmem:[%s3109_s22 + $0x28] sm:$0xff]  }
 0x41d   :  { %1385 = vmatprep.subr.bf16.mxu1 %v2366_v13  ;;  %v2055_v13 = vld [vmem:[%s3110_s19] ss:$0 sm:$0xff] }
 0x420   :  { %1386 = vmatpush1.bf16.msra.mxu1 %v2364_v14 }
 0x421   :  { %2214 = vmatprep.subr.bf16.mxu1 %v2412_v0 }
 0x4b6   :  { %v1140_v29 = vpop.f32.mrb[16].mxu1 }
 0x4b7   :  { %v1142_v31 = vpop.f32.mrb[17].mxu1 }
 0x4b8   :  { %v1144_v32 = vpop.f32.mrb[18].mxu1 }
 0x4b9   :  { %v1181_v18 = vpack.c.bf16 %v1144_v32, %v1140_v29  ;;  %v1146_v33 = vpop.f32.mrb[19].mxu1  ;;  %v2400_v29 = vld [vmem:[%s3111_s24 + $0x8] sm:$0xff]  }
 0x4ba   :  { %v1182_v34 = vpack.c.bf16 %v1146_v33, %v1142_v31  ;;  %v2057_v31 = vld [vmem:[%s3112_s21] ss:$0 sm:$0xff] }
 0x4bc   :  { %1387 = vmatprep.mubr.bf16.mxu1 %v1182_v34 }
 0x4bd   :  { %1388 = vmatmul.mubr.bf16.vlgmr.msra.gmra.mrb[20].mxu1 %v1181_v18 }
 0x4be   :  { %2230 = vmatprep.mubr.msk.bf16.mxu1 %vm2414_vm2, %v2412_v0  ;;  %2215 = vmatpush3.bf16.msra.mxu1 %v2383_v27 }
 0x4bf   :  { %2216 = vmatprep.subr.bf16.mxu1 %v2412_v0 }
 0x4c2   :  { %2217 = vmatpush3.bf16.msra.mxu1 %v2384_v28 }
 0x4c3   :  { %2218 = vmatprep.subr.bf16.mxu1 %v2412_v0 }
 0x4c6   :  { %2219 = vmatpush3.bf16.msra.mxu1 %v2385_v30 }
 0x4c7   :  { %2220 = vmatprep.subr.bf16.mxu1 %v2412_v0 }
 0x4ca   :  { %2221 = vmatpush3.bf16.msra.mxu1 %v2386_v55 }
 0x4cb   :  { %2222 = vmatprep.subr.bf16.mxu1 %v2412_v0 }
 0x4ce   :  { %2223 = vmatpush3.bf16.msra.mxu1 %v2387_v56 }
 0x4cf   :  { %2224 = vmatprep.subr.bf16.mxu1 %v2412_v0 }
 0x4d2   :  { %2225 = vmatpush3.bf16.msra.mxu1 %v2388_v57 }
 0x4d3   :  { %2226 = vmatprep.subr.bf16.mxu1 %v2412_v0 }
 0x4d6   :  { %2227 = vmatpush3.bf16.msra.mxu1 %v2389_v3 }
 0x4d7   :  { %2228 = vmatprep.subr.bf16.mxu1 %v2412_v0 }
 0x4da   :  { %2229 = vmatpush3.bf16.msra.mxu1 %v2390_v7 }
 0x4db   :  { %2254 = vmatprep.subr.bf16.mxu1 %v2412_v0 }
 0x590   :  { %v1389_v43 = vpop.f32.mrb[20].mxu1 }
 0x591   :  { %v1390_v44 = vadd.f32 %v1389_v43, %v1188_v41  ;;  %v1391_v45 = vpop.f32.mrb[21].mxu1 }
 0x592   :  { %v1392_v46 = vadd.f32 %v1391_v45, %v1192_v42  ;;  %v1393_v47 = vpop.f32.mrb[22].mxu1 }
 0x593   :  { %v1394_v48 = vadd.f32 %v1393_v47, %v1188_v41  ;;  %v1395_v49 = vpop.f32.mrb[23].mxu1  ;;  %v1398_v51 = vmax.f32 %v1390_v44, 0.0  ;;  %v2402_v41 = vld [vmem:[%s3111_s24 + $0x18] sm:$0xff]  }
 0x594   :  { %v1396_v50 = vadd.f32 %v1395_v49, %v1192_v42  ;;  %v1399_v52 = vmax.f32 %v1392_v46, 0.0  ;;  %v2066_v42 = vld [vmem:[%s3113_s23] ss:$0 sm:$0xff] }
 0x595   :  { %v1400_v24 = vmax.f32 %v1394_v48, 0.0 }
 0x596   :  { %v1401_v53 = vmax.f32 %v1396_v50, 0.0 }
 0x597   :  { %v1434_v5 = vpack.c.bf16 %v1400_v24, %v1398_v51 }
 0x598   :  { %v1435_v54 = vpack.c.bf16 %v1401_v53, %v1399_v52 }
 0x59a   :  { %1564 = vmatprep.mubr.bf16.mxu0 %v1435_v54 }
 0x59b   :  { %1565 = vmatmul.mubr.bf16.vlgmr.msra.gmra.mrb[28].mxu0 %v1434_v5 }
 0x59c   :  { %2210 = vmatprep.mubr.msk.bf16.mxu0 %vm2414_vm2, %v2412_v0 }
 0x66e   :  { %v2121_v58 = vpop.f32.mrb[28].mxu0 }
 0x66f   :  { %v2122_v59 = vpop.f32.mrb[29].mxu0 }
 0x670   :  { %v2123_v60 = vadd.f32 %v2122_v59, %v2121_v58  ;;  %v2124_v61 = vpop.f32.mrb[30].mxu0 }
 0x671   :  { %v2125_v62 = vpop.f32.mrb[31].mxu0 }
 0x672   :  { %v2126_v63 = vadd.f32 %v2125_v62, %v2124_v61 }
 0x674   :  { %v1573_v1 = vpack.c.bf16 %v2126_v63, %v2123_v60 }
 0x676   :  { %2209 = vmatpush3.bf16.msra.mxu0 %v1573_v1 }
 0x677   :  { %2234 = vmatprep.subr.bf16.mxu0 %v2412_v0 }
 0x679   :  { %2211 = vmatmul.mubr.msk.bf16.vlgmr.msra.gmra.mrb[32].mxu0 %vm552_vm6, %v2411_v2 }
 0x67a   :  { %2250 = vmatprep.mubr.msk.bf16.mxu0 %vm2414_vm2, %v2412_v0  ;;  %2235 = vmatpush3.bf16.msra.mxu0 %v2391_v8 }
 0x67b   :  { %2236 = vmatprep.subr.bf16.mxu0 %v2412_v0 }
 0x67e   :  { %2237 = vmatpush3.bf16.msra.mxu0 %v2392_v20 }
 0x67f   :  { %2238 = vmatprep.subr.bf16.mxu0 %v2412_v0 }
 0x682   :  { %2239 = vmatpush3.bf16.msra.mxu0 %v2393_v4 }
 0x683   :  { %2240 = vmatprep.subr.bf16.mxu0 %v2412_v0 }
 0x686   :  { %2241 = vmatpush3.bf16.msra.mxu0 %v2394_v10 }
 0x687   :  { %2242 = vmatprep.subr.bf16.mxu0 %v2412_v0 }
 0x68a   :  { %2243 = vmatpush3.bf16.msra.mxu0 %v2395_v11 }
 0x68b   :  { %2244 = vmatprep.subr.bf16.mxu0 %v2412_v0 }
 0x68e   :  { %2245 = vmatpush3.bf16.msra.mxu0 %v2396_v12 }
 0x68f   :  { %2246 = vmatprep.subr.bf16.mxu0 %v2412_v0 }
 0x692   :  { %2247 = vmatpush3.bf16.msra.mxu0 %v2397_v25 }
 0x693   :  { %2248 = vmatprep.subr.bf16.mxu0 %v2412_v0 }
 0x696   :  { %2249 = vmatpush3.bf16.msra.mxu0 %v2398_v9 }
 0x74c   :  { %v1615_v14 = vpop.f32.mrb[32].mxu0 }
 0x74d   :  { %v1616_v15 = vadd.f32 %v2055_v13, %v1615_v14  ;;  %v2212_v6 = vpop.f32.mrb[33].mxu0 }
 0x74e   :  { %v1618_v16 = vpop.f32.mrb[34].mxu0 }
 0x74f   :  { %v1619_v17 = vadd.f32 %v2055_v13, %v1618_v16  ;;  %v2213_v19 = vpop.f32.mrb[35].mxu0  ;;  %v1622_v21 = vmax.f32 %v1616_v15, 0.0 }
 0x751   :  { %v1623_v22 = vmax.f32 %v1619_v17, 0.0 }
 0x753   :  { %v1640_v23 = vpack.c.bf16 %v1623_v22, %v1622_v21 }
 0x755   :  { %2231 = vmatmul.mubr.bf16.vlgmr.msra.gmra.mrb[24].mxu1 %v1640_v23 }
 0x756   :  { %2262 = vmatprep.mubr.msk.bf16.mxu1 %vm2414_vm2, %v2412_v0  ;;  %2255 = vmatpush3.bf16.msra.mxu1 %v2399_v26 }
 0x757   :  { %2256 = vmatprep.subr.bf16.mxu1 %v2412_v0 }
 0x75a   :  { %2257 = vmatpush3.bf16.msra.mxu1 %v2400_v29 }
 0x75b   :  { %2258 = vmatprep.subr.bf16.mxu1 %v2412_v0 }
 0x75e   :  { %2259 = vmatpush3.bf16.msra.mxu1 %v2401_v40 }
 0x75f   :  { %2260 = vmatprep.subr.bf16.mxu1 %v2412_v0  ;;  %v2075_v0 = vld [vmem:[%s3114_s25] ss:$0 sm:$0xff] }
 0x762   :  { %2261 = vmatpush3.bf16.msra.mxu1 %v2402_v41 }
 0x828   :  { %v1730_v32 = vpop.f32.mrb[24].mxu1 }
 0x829   :  { %v1731_v18 = vadd.f32 %v2057_v31, %v1730_v32  ;;  %v2232_v33 = vpop.f32.mrb[25].mxu1 }
 0x82a   :  { %v1733_v34 = vpop.f32.mrb[26].mxu1 }
 0x82b   :  { %v1734_v35 = vadd.f32 %v2057_v31, %v1733_v34  ;;  %v2233_v36 = vpop.f32.mrb[27].mxu1  ;;  %v1737_v37 = vmax.f32 %v1731_v18, 0.0 }
 0x82d   :  { %v1738_v38 = vmax.f32 %v1734_v35, 0.0 }
 0x82f   :  { %v1755_v39 = vpack.c.bf16 %v1738_v38, %v1737_v37 }
 0x831   :  { %2251 = vmatmul.mubr.bf16.vlgmr.msra.gmra.mrb[36].mxu0 %v1755_v39 }
 0x904   :  { %v1845_v43 = vpop.f32.mrb[36].mxu0 }
 0x905   :  { %v1846_v44 = vadd.f32 %v2066_v42, %v1845_v43  ;;  %v2252_v45 = vpop.f32.mrb[37].mxu0 }
 0x906   :  { %v1848_v46 = vpop.f32.mrb[38].mxu0 }
 0x907   :  { %v1849_v47 = vadd.f32 %v2066_v42, %v1848_v46  ;;  %v2253_v48 = vpop.f32.mrb[39].mxu0  ;;  %v1852_v49 = vmax.f32 %v1846_v44, 0.0 }
 0x909   :  { %v1853_v50 = vmax.f32 %v1849_v47, 0.0 }
 0x90b   :  { %v1862_v51 = vpack.c.bf16 %v1853_v50, %v1852_v49 }
 0x90d   :  { %2263 = vmatmul.mubr.msk.bf16.vlgmr.msra.gmra.mrb[28].mxu1 %vm405_vm9, %v1862_v51 }
 0x9e0   :  { %v1931_v24 = vpop.f32.mrb[28].mxu1 }
 0x9e1   :  { %v1932_v52 = vadd.f32 %v2075_v0, %v1931_v24  ;;  %v2264_v53 = vpop.f32.mrb[29].mxu1 }
 0x9e2   :  { %v1934_v5 = vpop.f32.mrb[30].mxu1 }
 0x9e3   :  { %v2081_v54 = vmul.f32 -1.442695, %v1932_v52  ;;  %v1935_v27 = vadd.f32 %v2075_v0, %v1934_v5  ;;  %v2265_v28 = vpop.f32.mrb[31].mxu1 }
 0x9e5   :  { %2403 = vpow2.f32 %v2081_v54  ;;  %v2082_v30 = vmul.f32 -1.442695, %v1935_v27 }
 0x9e7   :  { %2405 = vpow2.f32 %v2082_v30 }
 0x9ef   :  { %v2404_v55 = vpop.eup %2403 }
 0x9f0   :  { %v1944_v56 = vadd.f32 1.0, %v2404_v55 }
 0x9f1   :  { %v2406_v57 = vpop.eup %2405 }
 0x9f2   :  { %2407 = vrcp.f32 %v1944_v56  ;;  %v1945_v58 = vadd.f32 1.0, %v2406_v57 }
 0x9f4   :  { %2409 = vrcp.f32 %v1945_v58 }
 0x9fc   :  { %v2408_v59 = vpop.eup %2407 }
 0x9fd   :  { %1950 = vst [vmem:[%s3115_s26] sm:$0xff] %v2408_v59 }
 0x9fe   :  { %v2410_v60 = vpop.eup %2409 }
 0x9ff   :  { %1951 = vst [vmem:[%s3115_s26 + $0x8] sm:$0xff] %v2410_v60 }

</bundles_post_ra>
